<compile_context>
chip_gen: v7x
topology: tpu7x:2x2x1
jax: 0.10.0
libtpu: 0.0.40
codegen_flags: <defaults>
</compile_context>

<pallas_src>
import functools

import jax
import jax.numpy as jnp
from jax import lax
from jax.experimental import pallas as pl
from jax.experimental.pallas import tpu as pltpu


PAD = 16  # bf16 sublane group: keeps the slab body store + middle-tap matmul load aligned


# ----------------------------------------------------------------------------
# Pallas kernels
# ----------------------------------------------------------------------------
def conv_block_kernel(xv_ref, halo_ref, scale_ref, shift_ref, w_ref, b_ref,
                      y_ref, stats_ref, slab_ref, *, normalize):
    """One Conv1d(k=4, s=2, p=1) block fused with the previous layer's GroupNorm+SiLU and with
    this layer's streamed GroupNorm statistics.

    Grid: (time-chunk[parallel], batch[parallel], time-tile[arbitrary]).

    xv_ref   : (1, TT, 2C)    paired-row view of the pre-norm input activations (bf16)
    halo_ref : (1, 1, 2, 2C)  rows [tile_start-1, tile_end] of the view (bf16)
    scale_ref: (1, 1, 2C)     folded GN scale of the previous layer (f32; unused if !normalize)
    shift_ref: (1, 1, 2C)     folded GN shift of the previous layer (f32)
    w_ref    : (3, 2C, C)     conv taps packed for the paired-row view (bf16)
    b_ref    : (1, 1, C)      conv bias (f32)
    y_ref    : (1, TT, C)     pre-norm conv output of this layer (bf16)
    stats_ref: (1, 1, 2, C)   per-channel [sum, sum^2] for this (chunk, batch) slice (f32)
    slab_ref : (TT+2*PAD, 2C) bf16 VMEM scratch; body stored at sublane-aligned row PAD
    """
    p = pl.program_id(0)
    ti = pl.program_id(2)
    npar = pl.num_programs(0)
    nti = pl.num_programs(2)
    tt = y_ref.shape[1]

    if normalize:
        scale = scale_ref[0]          # (1, 2C) f32
        shift = shift_ref[0]

    def prep(v):                      # previous layer's GN + SiLU (f32 math, bf16 storage)
        if not normalize:
            return v                  # first layer consumes the raw (already bf16) input
        h = v.astype(jnp.float32) * scale + shift
        h = h * jax.nn.sigmoid(h)
        return h.astype(jnp.bfloat16)

    halo = prep(halo_ref[0, 0])       # (2, 2C) bf16
    # Boundary tiles: the missing view rows are the conv's zero padding of the *activated*
    # stream, so they must be zero AFTER norm+SiLU -> mask after prep().
    is_first = jnp.logical_and(p == 0, ti == 0)
    is_last = jnp.logical_and(p == npar - 1, ti == nti - 1)
    lead = jnp.where(is_first, jnp.zeros_like(halo[0:1]), halo[0:1])
    trail = jnp.where(is_last, jnp.zeros_like(halo[1:2]), halo[1:2])

    slab_ref[PAD - 1:PAD, :] = lead
    slab_ref[PAD:PAD + tt, :] = prep(xv_ref[0])        # sublane-aligned bulk store
    slab_ref[PAD + tt:PAD + tt + 1, :] = trail

    # Strided conv == three accumulating matmuls over shifted windows of the slab.
    y = jnp.dot(slab_ref[PAD:PAD + tt, :], w_ref[1],           # aligned middle tap first
                preferred_element_type=jnp.float32)
    y = y + jnp.dot(slab_ref[PAD - 1:PAD - 1 + tt, :], w_ref[0],
                    preferred_element_type=jnp.float32)
    y = y + jnp.dot(slab_ref[PAD + 1:PAD + 1 + tt, :], w_ref[2],
                    preferred_element_type=jnp.float32)
    y = y + b_ref[0]                                            # (TT, C) f32

    # Streamed GroupNorm statistics (per-channel f32; group reduction happens in glue).
    tile_stats = jnp.concatenate(
        [jnp.sum(y, axis=0, keepdims=True),
         jnp.sum(y * y, axis=0, keepdims=True)], axis=0)        # (2, C)

    @pl.when(ti == 0)
    def _():
        stats_ref[...] = jnp.zeros_like(stats_ref)

    stats_ref[0, 0] = stats_ref[0, 0] + tile_stats
    y_ref[0] = y.astype(y_ref.dtype)


def final_conv_kernel(a_ref, halo_ref, scale_ref, shift_ref, w_ref, b_ref,
                      o_ref, slab_ref, *, soft_clip_scale):
    """Last GroupNorm+SiLU fused with the final Conv1d(k=4, s=1, p=0, C_out=1), time-tiled.

    a_ref    : (1, TTF, C)   pre-norm activations of the last block (bf16)
    halo_ref : (1, 1, 3, C)  3 trailing rows (zeros for the last tile; those outputs are junk)
    o_ref    : (1, 1, T4)    lane-dense resident output block (time on the lane axis)
    slab_ref : (TTF+PAD, C)  bf16 scratch
    """
    ti = pl.program_id(1)
    c = a_ref.shape[2]
    ttf = a_ref.shape[1]

    scale = scale_ref[0]              # (1, C)
    shift = shift_ref[0]

    def prep(v):
        h = v.astype(jnp.float32) * scale + shift
        h = h * jax.nn.sigmoid(h)
        return h.astype(jnp.bfloat16)

    slab_ref[0:ttf, :] = prep(a_ref[0])
    slab_ref[ttf:ttf + 3, :] = prep(halo_ref[0, 0])

    acc = jnp.dot(slab_ref[0:ttf, :], w_ref[0:c],
                  preferred_element_type=jnp.float32)
    acc = acc + jnp.dot(slab_ref[1:ttf + 1, :], w_ref[c:2 * c],
                        preferred_element_type=jnp.float32)
    acc = acc + jnp.dot(slab_ref[2:ttf + 2, :], w_ref[2 * c:3 * c],
                        preferred_element_type=jnp.float32)
    acc = acc + jnp.dot(slab_ref[3:ttf + 3, :], w_ref[3 * c:4 * c],
                        preferred_element_type=jnp.float32)
    y = acc + b_ref[...]                                        # (TTF, 1) f32
    if soft_clip_scale is not None:
        y = soft_clip_scale * jnp.tanh(y / soft_clip_scale)
    # Lane-dense store: transpose the tap accumulator and write this tile's lane slice of the
    # resident (1, 1, T4) output block.
    o_ref[0, :, pl.ds(ti * ttf, ttf)] = jnp.transpose(y, (1, 0)).astype(o_ref.dtype)


# ----------------------------------------------------------------------------
# Glue: tiling, halos, parameter packing, pallas_call wrappers
# ----------------------------------------------------------------------------
def _chip_budgets(channels):
    """(tile_cap, vmem_limit_bytes) derived from the local chip's VMEM capacity."""
    try:
        vmem = int(pltpu.get_tpu_info().vmem_capacity_bytes)
    except Exception:
        vmem = 128 * 1024 * 1024
    vmem_limit = max(32 * 1024 * 1024, (vmem * 3) // 4)   # ~96 MiB v5e/v6e, ~48 MiB v7x
    # Per-step live bytes ~ 16 * tt * C (double-buffered bf16 xv + y, bf16 slab, weights);
    # target about half the scoped limit so pipelining has headroom.
    budget = vmem_limit // 2
    cap = budget // (16 * max(int(channels), 1))
    cap = max(512, min(4096, (cap // 16) * 16))
    return cap, vmem_limit


def choose_tile(t_out, cap):
    """Largest legal time tile: whole axis if it fits, else the largest divisor <= cap that is
    a multiple of 16 (bf16 sublane packing), falling back to a multiple of 8."""
    if t_out <= cap:
        return t_out
    for step in (16, 8):
        start = cap - cap % step
        for tt in range(start, step - 1, -step):
            if t_out % tt == 0:
                return tt
    # TODO(synk): ragged-tail (pad + masked stats) for awkward time lengths; fall back to the
    #             whole axis (correct, but may exceed the VMEM budget for huge prime-ish T).
    return t_out


def pack_strided_weight(w):
    """PyTorch Conv1d weight (C_out, C_in, 4) -> (3, 2*C_in, C_out) bf16 (paired-row view)."""
    c_out, c_in, _ = w.shape
    wt = jnp.transpose(w, (2, 1, 0))                  # (4, C_in, C_out)
    z = jnp.zeros((c_in, c_out), w.dtype)
    wl = jnp.concatenate([z, wt[0]], axis=0)          # tap 0 hits the odd half of view row g-1
    wm = jnp.concatenate([wt[1], wt[2]], axis=0)      # taps 1,2 hit view row g
    wr = jnp.concatenate([wt[3], z], axis=0)          # tap 3 hits the even half of view row g+1
    return jnp.stack([wl, wm, wr], axis=0).astype(jnp.bfloat16)


def build_halos(xv, tt, nt):
    """Merged per-tile halos: (B, NT, 2, 2C); [..., 0, :] = lead row, [..., 1, :] = trail row."""
    bsz, _, c2 = xv.shape
    z = jnp.zeros((bsz, 1, c2), xv.dtype)
    if nt == 1:
        lead, trail = z, z
    else:
        lead = jnp.concatenate([z, xv[:, tt - 1:nt * tt - 1:tt, :]], axis=1)
        trail = jnp.concatenate([xv[:, tt:nt * tt:tt, :], z], axis=1)
    return jnp.stack([lead, trail], axis=2)           # (B, NT, 2, 2C)


def build_final_halos(y4, ttf, ntf):
    """3 trailing rows per final-conv tile: (B, NTF, 3, C); zeros for the last tile."""
    bsz, _, c = y4.shape
    if ntf == 1:
        return jnp.zeros((bsz, 1, 3, c), y4.dtype)
    shifted = jnp.concatenate([y4[:, ttf:, :], jnp.zeros((bsz, ttf, c), y4.dtype)], axis=1)
    return shifted.reshape(bsz, ntf, ttf, c)[:, :, :3, :]


def stats_to_scale_shift(stats, gamma, beta, count, num_groups, eps=1e-5):
    """Fold GroupNorm(mean, biased var) + affine into per-(batch, channel) scale/shift."""
    bsz, _, c = stats.shape
    per_group = stats.reshape(bsz, 2, num_groups, c // num_groups).sum(axis=-1)  # (B, 2, G)
    mean = per_group[:, 0] / count
    var = jnp.maximum(per_group[:, 1] / count - mean * mean, 0.0)   # clamp f32 cancellation
    inv = lax.rsqrt(var + eps)
    rep = c // num_groups
    mean_c = jnp.repeat(mean, rep, axis=1)            # (B, C)
    inv_c = jnp.repeat(inv, rep, axis=1)
    scale = inv_c * gamma[None, :]
    shift = beta[None, :] - mean_c * scale
    return scale, shift


def conv_block_call(x, scale, shift, w, b, *, normalize, tile_cap, time_chunks, vmem_limit):
    """x: (B, T_in, C) pre-norm activations (bf16). Returns (y_pre_norm_bf16, stats_f32)."""
    bsz, t_in, c = x.shape
    t_out = t_in // 2
    c2 = 2 * c
    xv = x.reshape(bsz, t_out, c2)                    # paired-row view: free reshape
    tt = choose_tile(t_out, tile_cap)
    nt = t_out // tt
    npar = time_chunks if (time_chunks > 1 and nt % time_chunks == 0) else 1
    nti = nt // npar
    halos = build_halos(xv, tt, nt)

    if scale is None:                                 # first layer: conv of the raw input
        scale2 = jnp.ones((bsz, 1, c2), jnp.float32)
        shift2 = jnp.zeros((bsz, 1, c2), jnp.float32)
    else:
        scale2 = jnp.concatenate([scale, scale], axis=-1).reshape(bsz, 1, c2).astype(jnp.float32)
        shift2 = jnp.concatenate([shift, shift], axis=-1).reshape(bsz, 1, c2).astype(jnp.float32)

    wpk = pack_strided_weight(w)                      # (3, 2C, C) bf16
    b2 = b.reshape(1, 1, c).astype(jnp.float32)

    # Small-C layers are HBM-bound with short per-tile compute: deepen the xv pipeline.
    if c <= 128 and nti >= 4:
        xv_spec = pl.BlockSpec((1, tt, c2), lambda p, bb, ti: (bb, p * nti + ti, 0),
                               pipeline_mode=pl.Buffered(3))
    else:
        xv_spec = pl.BlockSpec((1, tt, c2), lambda p, bb, ti: (bb, p * nti + ti, 0))

    kernel = functools.partial(conv_block_kernel, normalize=normalize)
    y, stats = pl.pallas_call(
        kernel,
        out_shape=(jax.ShapeDtypeStruct((bsz, t_out, c), jnp.bfloat16),
                   jax.ShapeDtypeStruct((npar, bsz, 2, c), jnp.float32)),
        grid_spec=pltpu.PrefetchScalarGridSpec(
            num_scalar_prefetch=0,
            grid=(npar, bsz, nti),
            in_specs=[
                xv_spec,
                pl.BlockSpec((1, 1, 2, c2), lambda p, bb, ti: (bb, p * nti + ti, 0, 0)),
                pl.BlockSpec((1, 1, c2), lambda p, bb, ti: (bb, 0, 0)),
                pl.BlockSpec((1, 1, c2), lambda p, bb, ti: (bb, 0, 0)),
                pl.BlockSpec((3, c2, c), lambda p, bb, ti: (0, 0, 0)),
                pl.BlockSpec((1, 1, c), lambda p, bb, ti: (0, 0, 0)),
            ],
            out_specs=(
                pl.BlockSpec((1, tt, c), lambda p, bb, ti: (bb, p * nti + ti, 0)),
                pl.BlockSpec((1, 1, 2, c), lambda p, bb, ti: (p, bb, 0, 0)),
            ),
            scratch_shapes=[pltpu.VMEM((tt + 2 * PAD, c2), jnp.bfloat16)],
        ),
        compiler_params=pltpu.CompilerParams(
            dimension_semantics=("parallel", "parallel", "arbitrary"),
            vmem_limit_bytes=vmem_limit,
        ),
    )(xv, halos, scale2, shift2, wpk, b2)
    return y, stats.sum(axis=0)                       # fold parallel time chunks: (B, 2, C)


def final_conv_call(y4, scale, shift, w_final, b_final, soft_clip_scale, *,
                    tile_cap, vmem_limit):
    """y4: (B, T4, C) bf16 pre-norm. Returns (B, 1, T4) f32; only first T4-3 lanes are valid."""
    bsz, t4, c = y4.shape
    ttf = choose_tile(t4, tile_cap)
    ntf = t4 // ttf
    halos = build_final_halos(y4, ttf, ntf)
    wpk = jnp.transpose(w_final, (2, 1, 0)).reshape(4 * c, 1).astype(jnp.bfloat16)
    b2 = b_final.reshape(1, 1).astype(jnp.float32)
    scale3 = scale.reshape(bsz, 1, c).astype(jnp.float32)
    shift3 = shift.reshape(bsz, 1, c).astype(jnp.float32)
    kernel = functools.partial(final_conv_kernel, soft_clip_scale=soft_clip_scale)
    return pl.pallas_call(
        kernel,
        out_shape=jax.ShapeDtypeStruct((bsz, 1, t4), jnp.float32),
        grid_spec=pltpu.PrefetchScalarGridSpec(
            num_scalar_prefetch=0,
            grid=(bsz, ntf),
            in_specs=[
                pl.BlockSpec((1, ttf, c), lambda bb, ti: (bb, ti, 0)),
                pl.BlockSpec((1, 1, 3, c), lambda bb, ti: (bb, ti, 0, 0)),
                pl.BlockSpec((1, 1, c), lambda bb, ti: (bb, 0, 0)),
                pl.BlockSpec((1, 1, c), lambda bb, ti: (bb, 0, 0)),
                pl.BlockSpec((4 * c, 1), lambda bb, ti: (0, 0)),
                pl.BlockSpec((1, 1), lambda bb, ti: (0, 0)),
            ],
            out_specs=pl.BlockSpec((1, 1, t4), lambda bb, ti: (bb, 0, 0)),  # lane-dense, resident
            scratch_shapes=[pltpu.VMEM((ttf + PAD, c), jnp.bfloat16)],
        ),
        compiler_params=pltpu.CompilerParams(
            dimension_semantics=("parallel", "arbitrary"),
            vmem_limit_bytes=vmem_limit,
        ),
    )(y4, halos, scale3, shift3, wpk, b2)


# ----------------------------------------------------------------------------
# Forward pass (PyTorch-facing: NCL in, NCL out)
# ----------------------------------------------------------------------------
def conv_discriminator_forward(x_bct, params, soft_clip_scale=None, num_groups=32,
                               tile_cap=None, time_chunks=None):
    """x_bct: (B, C, T) f32 -> (B, 1, T//16 - 3) f32 (matches ConvDiscriminator.forward)."""
    bsz, c, t = x_bct.shape
    assert c % num_groups == 0, "GroupNorm(32) requires channels % 32 == 0"
    assert t % 16 == 0 and t >= 64, "T must be a multiple of 16 and >= 64"

    auto_cap, vmem_limit = _chip_budgets(c)
    if tile_cap is None:
        tile_cap = auto_cap
    if time_chunks is None:
        # v7x has 2 TensorCores; at B == 1 add a parallel time-chunk axis so both get work.
        time_chunks = 1 if bsz >= 2 else 2

    # channels-last, bf16 for the DMA/MXU-heavy activation stream
    stream = jnp.transpose(x_bct, (0, 2, 1)).astype(jnp.bfloat16)     # (B, T, C)
    scale = shift = None
    normalize = False
    t_cur = t
    for (w, b, gamma, beta) in params["blocks"]:
        stream, stats = conv_block_call(stream, scale, shift, w, b,
                                        normalize=normalize, tile_cap=tile_cap,
                                        time_chunks=time_chunks, vmem_limit=vmem_limit)
        t_cur //= 2
        count = float(t_cur * (c // num_groups))
        scale, shift = stats_to_scale_shift(stats, gamma, beta, count, num_groups)
        normalize = True

    out = final_conv_call(stream, scale, shift, params["final_w"], params["final_b"],
                          soft_clip_scale, tile_cap=tile_cap, vmem_limit=vmem_limit)
    return out[:, :, :t_cur - 3]                      # drop the junk tail lanes


# ----------------------------------------------------------------------------
# Parameters + pure-JAX reference
# ----------------------------------------------------------------------------
def init_params(key, channels):
    """Deterministic synthetic parameters mirroring ConvDiscriminator.__init__ shapes."""
    params = {"blocks": []}
    k = 4
    for _ in range(4):
        key, k1, k2, k3, k4 = jax.random.split(key, 5)
        std = 1.0 / jnp.sqrt(channels * k)
        w = jax.random.normal(k1, (channels, channels, k), jnp.float32) * std
        b = jax.random.normal(k2, (channels,), jnp.float32) * 0.1
        gamma = 1.0 + 0.1 * jax.random.normal(k3, (channels,), jnp.float32)
        beta = 0.1 * jax.random.normal(k4, (channels,), jnp.float32)
        params["blocks"].append((w, b, gamma, beta))
    key, k1, k2 = jax.random.split(key, 3)
    std = 1.0 / jnp.sqrt(channels * k)
    params["final_w"] = jax.random.normal(k1, (1, channels, k), jnp.float32) * std
    params["final_b"] = jax.random.normal(k2, (1,), jnp.float32) * 0.1
    return params


def ref_forward(x_bct, params, soft_clip_scale=None, num_groups=32, eps=1e-5):
    """Plain-JAX reference mirroring the kernel's numerics (bf16 matmul operands, bf16-stored
    activations, f32 accumulation and f32 GroupNorm statistics).  Up to those casts this is
    exactly ConvDiscriminator.forward."""
    a = x_bct.astype(jnp.bfloat16)
    for (w, b, gamma, beta) in params["blocks"]:
        y = lax.conv_general_dilated(a, w.astype(jnp.bfloat16), window_strides=(2,),
                                     padding=((1, 1),),
                                     dimension_numbers=("NCH", "OIH", "NCH"),
                                     preferred_element_type=jnp.float32)
        y = y + b[None, :, None]
        bsz, c, t = y.shape
        yg = y.reshape(bsz, num_groups, (c // num_groups) * t)
        mean = yg.mean(axis=-1)[:, :, None]
        inv = lax.rsqrt(yg.var(axis=-1)[:, :, None] + eps)
        yq = y.astype(jnp.bfloat16).astype(jnp.float32)           # activations stored in bf16
        hg = (yq.reshape(bsz, num_groups, (c // num_groups) * t) - mean) * inv
        h = hg.reshape(bsz, c, t) * gamma[None, :, None] + beta[None, :, None]
        h = h * jax.nn.sigmoid(h)
        a = h.astype(jnp.bfloat16)
    y = lax.conv_general_dilated(a, params["final_w"].astype(jnp.bfloat16),
                                 window_strides=(1,), padding=((0, 0),),
                                 dimension_numbers=("NCH", "OIH", "NCH"),
                                 preferred_element_type=jnp.float32)
    y = y + params["final_b"][None, :, None]
    if soft_clip_scale is not None:
        y = soft_clip_scale * jnp.tanh(y / soft_clip_scale)
    return y


if __name__ == "__main__":
    B, C, T = 2, 64, 128          # channels % 32 == 0 (GroupNorm), T % 16 == 0
    key = jax.random.PRNGKey(0)
    key, xkey, x2key = jax.random.split(key, 3)
    x = jax.random.normal(xkey, (B, C, T), jnp.float32)
    x_long = jax.random.normal(x2key, (B, C, 2 * T), jnp.float32)
    params = init_params(key, C)

    # 1) default: chip-derived tile cap (single time tile per layer at this size)
    out = jax.block_until_ready(conv_discriminator_forward(x, params))
    # 2) small tiles + soft clip: multi-tile halos, streamed GN stats, Buffered(3) xv path
    out_clip = jax.block_until_ready(
        conv_discriminator_forward(x, params, soft_clip_scale=5.0, tile_cap=16))
    # 3) batch-1: parallel time-chunk grid axis (keeps both v7x TensorCores busy)
    out_b1 = jax.block_until_ready(
        conv_discriminator_forward(x[:1], params, tile_cap=16))
    # 4) longer sequence, tiny tiles: multi-tile, lane-dense resident-output final conv
    out_long = jax.block_until_ready(
        conv_discriminator_forward(x_long, params, tile_cap=8))

    ref = jax.block_until_ready(ref_forward(x, params))
    ref_clip = jax.block_until_ready(ref_forward(x, params, soft_clip_scale=5.0))
    ref_long = jax.block_until_ready(ref_forward(x_long, params))

    assert out.shape == (B, 1, T // 16 - 3), out.shape
    assert out_long.shape == (B, 1, (2 * T) // 16 - 3), out_long.shape
    checks = ((out, ref), (out_clip, ref_clip), (out_b1, ref[:1]), (out_long, ref_long))
    for got, want in checks:
        err = float(jnp.max(jnp.abs(got - want)))
        assert jnp.allclose(got, want, rtol=2e-3, atol=2e-3), err

    print("KERNEL_OK")
</pallas_src>

<mosaic_0001>
module attributes {stable_mosaic.version = 11 : i64} {
  func.func @conv_block_kernel(%arg0: i32, %arg1: i32, %arg2: i32, %arg3: memref<1x64x128xbf16, #tpu.memory_space<vmem>>, %arg4: memref<1x1x2x128xbf16, #tpu.memory_space<vmem>>, %arg5: memref<1x1x128xf32, #tpu.memory_space<vmem>>, %arg6: memref<1x1x128xf32, #tpu.memory_space<vmem>>, %arg7: memref<3x128x64xbf16, #tpu.memory_space<vmem>>, %arg8: memref<1x1x64xf32, #tpu.memory_space<vmem>>, %arg9: memref<1x64x64xbf16, #tpu.memory_space<vmem>>, %arg10: memref<1x1x2x64xf32, #tpu.memory_space<vmem>>, %arg11: memref<96x128xbf16, #tpu.memory_space<vmem>>) attributes {dimension_semantics = [#tpu.dimension_semantics<parallel>, #tpu.dimension_semantics<parallel>, #tpu.dimension_semantics<arbitrary>], iteration_bounds = array<i64: 1, 2, 1>, scalar_prefetch = 0 : i64, scratch_operands = 1 : i64, tpu.core_type = #tpu.core_type<tc>, window_params = [{transform_indices = @transform_0, window_bounds = array<i64: 1, 64, 128>}, {transform_indices = @transform_1, window_bounds = array<i64: 1, 1, 2, 128>}, {transform_indices = @transform_2, window_bounds = array<i64: 1, 1, 128>}, {transform_indices = @transform_3, window_bounds = array<i64: 1, 1, 128>}, {pipeline_mode = #tpu.pipeline_mode<synchronous>, transform_indices = @transform_4, window_bounds = array<i64: 3, 128, 64>}, {pipeline_mode = #tpu.pipeline_mode<synchronous>, transform_indices = @transform_5, window_bounds = array<i64: 1, 1, 64>}, {transform_indices = @transform_6, window_bounds = array<i64: 1, 64, 64>}, {transform_indices = @transform_7, window_bounds = array<i64: 1, 1, 2, 64>}]} {
    %c0 = arith.constant 0 : index
    %c0_0 = arith.constant 0 : index
    %c0_1 = arith.constant 0 : index
    %c0_2 = arith.constant 0 : index
    %0 = vector.load %arg4[%c0, %c0_0, %c0_1, %c0_2] : memref<1x1x2x128xbf16, #tpu.memory_space<vmem>>, vector<1x1x2x128xbf16>
    %1 = vector.shape_cast %0 : vector<1x1x2x128xbf16> to vector<2x128xbf16>
    %c0_i32 = arith.constant 0 : i32
    %2 = arith.cmpi eq, %arg0, %c0_i32 : i32
    %c0_i32_3 = arith.constant 0 : i32
    %3 = arith.cmpi eq, %arg2, %c0_i32_3 : i32
    %4 = arith.andi %2, %3 : i1
    %c0_i32_4 = arith.constant 0 : i32
    %5 = arith.cmpi eq, %arg0, %c0_i32_4 : i32
    %c0_i32_5 = arith.constant 0 : i32
    %6 = arith.cmpi eq, %arg2, %c0_i32_5 : i32
    %7 = arith.andi %5, %6 : i1
    %cst = arith.constant 0.000000e+00 : bf16
    %8 = vector.broadcast %cst : bf16 to vector<1x128xbf16>
    %9 = vector.extract_strided_slice %1 {offsets = [0, 0], sizes = [1, 128], strides = [1, 1]} : vector<2x128xbf16> to vector<1x128xbf16>
    %10 = arith.select %4, %8, %9 : vector<1x128xbf16>
    %cst_6 = arith.constant 0.000000e+00 : bf16
    %11 = vector.broadcast %cst_6 : bf16 to vector<1x128xbf16>
    %12 = vector.extract_strided_slice %1 {offsets = [1, 0], sizes = [1, 128], strides = [1, 1]} : vector<2x128xbf16> to vector<1x128xbf16>
    %13 = arith.select %7, %11, %12 : vector<1x128xbf16>
    %c15 = arith.constant 15 : index
    %c0_7 = arith.constant 0 : index
    %14 = vector.load %arg11[%c15, %c0_7] : memref<96x128xbf16, #tpu.memory_space<vmem>>, vector<1x128xbf16>
    tpu.vector_store %arg11[%c15, %c0_7], %10 {strides = array<i32>} : memref<96x128xbf16, #tpu.memory_space<vmem>>, vector<1x128xbf16>,
    %c0_8 = arith.constant 0 : index
    %c0_9 = arith.constant 0 : index
    %c0_10 = arith.constant 0 : index
    %15 = vector.load %arg3[%c0_8, %c0_9, %c0_10] : memref<1x64x128xbf16, #tpu.memory_space<vmem>>, vector<1x64x128xbf16>
    %16 = vector.shape_cast %15 : vector<1x64x128xbf16> to vector<64x128xbf16>
    %c16 = arith.constant 16 : index
    %c0_11 = arith.constant 0 : index
    %17 = vector.load %arg11[%c16, %c0_11] : memref<96x128xbf16, #tpu.memory_space<vmem>>, vector<64x128xbf16>
    tpu.vector_store %arg11[%c16, %c0_11], %16 {strides = array<i32>} : memref<96x128xbf16, #tpu.memory_space<vmem>>, vector<64x128xbf16>,
    %c80 = arith.constant 80 : index
    %c0_12 = arith.constant 0 : index
    %18 = vector.load %arg11[%c80, %c0_12] : memref<96x128xbf16, #tpu.memory_space<vmem>>, vector<1x128xbf16>
    tpu.vector_store %arg11[%c80, %c0_12], %13 {strides = array<i32>} : memref<96x128xbf16, #tpu.memory_space<vmem>>, vector<1x128xbf16>,
    %c16_13 = arith.constant 16 : index
    %c0_14 = arith.constant 0 : index
    %19 = vector.load %arg11[%c16_13, %c0_14] : memref<96x128xbf16, #tpu.memory_space<vmem>>, vector<64x128xbf16>
    %c1 = arith.constant 1 : index
    %c0_15 = arith.constant 0 : index
    %c0_16 = arith.constant 0 : index
    %20 = vector.load %arg7[%c1, %c0_15, %c0_16] : memref<3x128x64xbf16, #tpu.memory_space<vmem>>, vector<1x128x64xbf16>
    %21 = vector.shape_cast %20 : vector<1x128x64xbf16> to vector<128x64xbf16>
    %cst_17 = arith.constant dense<0.000000e+00> : vector<64x64xf32>
    %22 = tpu.matmul %19, %21, %cst_17 {dimension_numbers = #tpu.dot_dimension_numbers<[1], [0], [0], [1], [0, 0, 1, 1], [], []>} : vector<64x128xbf16>, vector<128x64xbf16>, vector<64x64xf32> -> vector<64x64xf32>
    %c15_18 = arith.constant 15 : index
    %c0_19 = arith.constant 0 : index
    %23 = vector.load %arg11[%c15_18, %c0_19] : memref<96x128xbf16, #tpu.memory_space<vmem>>, vector<64x128xbf16>
    %c0_20 = arith.constant 0 : index
    %c0_21 = arith.constant 0 : index
    %c0_22 = arith.constant 0 : index
    %24 = vector.load %arg7[%c0_20, %c0_21, %c0_22] : memref<3x128x64xbf16, #tpu.memory_space<vmem>>, vector<1x128x64xbf16>
    %25 = vector.shape_cast %24 : vector<1x128x64xbf16> to vector<128x64xbf16>
    %cst_23 = arith.constant dense<0.000000e+00> : vector<64x64xf32>
    %26 = tpu.matmul %23, %25, %cst_23 {dimension_numbers = #tpu.dot_dimension_numbers<[1], [0], [0], [1], [0, 0, 1, 1], [], []>} : vector<64x128xbf16>, vector<128x64xbf16>, vector<64x64xf32> -> vector<64x64xf32>
    %27 = arith.addf %22, %26 : vector<64x64xf32>
    %c17 = arith.constant 17 : index
    %c0_24 = arith.constant 0 : index
    %28 = vector.load %arg11[%c17, %c0_24] : memref<96x128xbf16, #tpu.memory_space<vmem>>, vector<64x128xbf16>
    %c2 = arith.constant 2 : index
    %c0_25 = arith.constant 0 : index
    %c0_26 = arith.constant 0 : index
    %29 = vector.load %arg7[%c2, %c0_25, %c0_26] : memref<3x128x64xbf16, #tpu.memory_space<vmem>>, vector<1x128x64xbf16>
    %30 = vector.shape_cast %29 : vector<1x128x64xbf16> to vector<128x64xbf16>
    %cst_27 = arith.constant dense<0.000000e+00> : vector<64x64xf32>
    %31 = tpu.matmul %28, %30, %cst_27 {dimension_numbers = #tpu.dot_dimension_numbers<[1], [0], [0], [1], [0, 0, 1, 1], [], []>} : vector<64x128xbf16>, vector<128x64xbf16>, vector<64x64xf32> -> vector<64x64xf32>
    %32 = arith.addf %27, %31 : vector<64x64xf32>
    %c0_28 = arith.constant 0 : index
    %c0_29 = arith.constant 0 : index
    %c0_30 = arith.constant 0 : index
    %33 = vector.load %arg8[%c0_28, %c0_29, %c0_30] : memref<1x1x64xf32, #tpu.memory_space<vmem>>, vector<1x1x64xf32>
    %34 = vector.shape_cast %33 : vector<1x1x64xf32> to vector<1x64xf32>
    %35 = vector.broadcast %34 : vector<1x64xf32> to vector<64x64xf32>
    %36 = arith.addf %32, %35 : vector<64x64xf32>
    %cst_31 = arith.constant dense<0.000000e+00> : vector<64xf32>
    %37 = vector.multi_reduction <add>, %36, %cst_31 [0] : vector<64x64xf32> to vector<64xf32>
    %38 = vector.shape_cast %37 : vector<64xf32> to vector<1x64xf32>
    %39 = arith.mulf %36, %36 : vector<64x64xf32>
    %cst_32 = arith.constant dense<0.000000e+00> : vector<64xf32>
    %40 = vector.multi_reduction <add>, %39, %cst_32 [0] : vector<64x64xf32> to vector<64xf32>
    %41 = vector.shape_cast %40 : vector<64xf32> to vector<1x64xf32>
    %42 = tpu.concatenate %38, %41 in 0 : vector<1x64xf32>, vector<1x64xf32> -> vector<2x64xf32>
    %c0_i32_33 = arith.constant 0 : i32
    %43 = arith.cmpi eq, %arg2, %c0_i32_33 : i32
    %44 = arith.extui %43 : i1 to i32
    %c0_i32_34 = arith.constant 0 : i32
    %45 = arith.cmpi ne, %44, %c0_i32_34 : i32
    scf.if %45 {
      %cst_46 = arith.constant 0.000000e+00 : f32
      %56 = vector.broadcast %cst_46 : f32 to vector<1x1x2x64xf32>
      %c0_47 = arith.constant 0 : index
      %c0_48 = arith.constant 0 : index
      %c0_49 = arith.constant 0 : index
      %c0_50 = arith.constant 0 : index
      %57 = vector.load %arg10[%c0_47, %c0_48, %c0_49, %c0_50] : memref<1x1x2x64xf32, #tpu.memory_space<vmem>>, vector<1x1x2x64xf32>
      tpu.vector_store %arg10[%c0_47, %c0_48, %c0_49, %c0_50], %56 {strides = array<i32>} : memref<1x1x2x64xf32, #tpu.memory_space<vmem>>, vector<1x1x2x64xf32>,
    } else {
    }
    %c0_35 = arith.constant 0 : index
    %c0_36 = arith.constant 0 : index
    %c0_37 = arith.constant 0 : index
    %c0_38 = arith.constant 0 : index
    %46 = vector.load %arg10[%c0_35, %c0_36, %c0_37, %c0_38] : memref<1x1x2x64xf32, #tpu.memory_space<vmem>>, vector<1x1x2x64xf32>
    %47 = vector.shape_cast %46 : vector<1x1x2x64xf32> to vector<2x64xf32>
    %48 = arith.addf %47, %42 : vector<2x64xf32>
    %c0_39 = arith.constant 0 : index
    %c0_40 = arith.constant 0 : index
    %c0_41 = arith.constant 0 : index
    %c0_42 = arith.constant 0 : index
    %49 = vector.load %arg10[%c0_39, %c0_40, %c0_41, %c0_42] : memref<1x1x2x64xf32, #tpu.memory_space<vmem>>, vector<1x1x2x64xf32>
    %50 = vector.shape_cast %49 : vector<1x1x2x64xf32> to vector<2x64xf32>
    %51 = vector.shape_cast %48 : vector<2x64xf32> to vector<1x1x2x64xf32>
    tpu.vector_store %arg10[%c0_39, %c0_40, %c0_41, %c0_42], %51 {strides = array<i32>} : memref<1x1x2x64xf32, #tpu.memory_space<vmem>>, vector<1x1x2x64xf32>,
    %52 = arith.truncf %36 : vector<64x64xf32> to vector<64x64xbf16>
    %c0_43 = arith.constant 0 : index
    %c0_44 = arith.constant 0 : index
    %c0_45 = arith.constant 0 : index
    %53 = vector.load %arg9[%c0_43, %c0_44, %c0_45] : memref<1x64x64xbf16, #tpu.memory_space<vmem>>, vector<1x64x64xbf16>
    %54 = vector.shape_cast %53 : vector<1x64x64xbf16> to vector<64x64xbf16>
    %55 = vector.shape_cast %52 : vector<64x64xbf16> to vector<1x64x64xbf16>
    tpu.vector_store %arg9[%c0_43, %c0_44, %c0_45], %55 {strides = array<i32>} : memref<1x64x64xbf16, #tpu.memory_space<vmem>>, vector<1x64x64xbf16>,
    return
  }
  func.func @transform_0(%arg0: i32, %arg1: i32, %arg2: i32) -> (i32, i32, i32) {
    %c1_i32 = arith.constant 1 : i32
    %0 = arith.muli %arg0, %c1_i32 : i32
    %1 = arith.addi %0, %arg2 : i32
    %c0_i32 = arith.constant 0 : i32
    %c0_i32_0 = arith.constant 0 : i32
    return %arg1, %1, %c0_i32 : i32, i32, i32
  }
  func.func @transform_1(%arg0: i32, %arg1: i32, %arg2: i32) -> (i32, i32, i32, i32) {
    %c1_i32 = arith.constant 1 : i32
    %0 = arith.muli %arg0, %c1_i32 : i32
    %1 = arith.addi %0, %arg2 : i32
    %c0_i32 = arith.constant 0 : i32
    %c0_i32_0 = arith.constant 0 : i32
    %c0_i32_1 = arith.constant 0 : i32
    return %arg1, %1, %c0_i32, %c0_i32_0 : i32, i32, i32, i32
  }
  func.func @transform_2(%arg0: i32, %arg1: i32, %arg2: i32) -> (i32, i32, i32) {
    %c0_i32 = arith.constant 0 : i32
    %c0_i32_0 = arith.constant 0 : i32
    %c0_i32_1 = arith.constant 0 : i32
    return %arg1, %c0_i32, %c0_i32_0 : i32, i32, i32
  }
  func.func @transform_3(%arg0: i32, %arg1: i32, %arg2: i32) -> (i32, i32, i32) {
    %c0_i32 = arith.constant 0 : i32
    %c0_i32_0 = arith.constant 0 : i32
    %c0_i32_1 = arith.constant 0 : i32
    return %arg1, %c0_i32, %c0_i32_0 : i32, i32, i32
  }
  func.func @transform_4(%arg0: i32, %arg1: i32, %arg2: i32) -> (i32, i32, i32) {
    %c0_i32 = arith.constant 0 : i32
    %c0_i32_0 = arith.constant 0 : i32
    %c0_i32_1 = arith.constant 0 : i32
    %c0_i32_2 = arith.constant 0 : i32
    return %c0_i32, %c0_i32_0, %c0_i32_1 : i32, i32, i32
  }
  func.func @transform_5(%arg0: i32, %arg1: i32, %arg2: i32) -> (i32, i32, i32) {
    %c0_i32 = arith.constant 0 : i32
    %c0_i32_0 = arith.constant 0 : i32
    %c0_i32_1 = arith.constant 0 : i32
    %c0_i32_2 = arith.constant 0 : i32
    return %c0_i32, %c0_i32_0, %c0_i32_1 : i32, i32, i32
  }
  func.func @transform_6(%arg0: i32, %arg1: i32, %arg2: i32) -> (i32, i32, i32) {
    %c1_i32 = arith.constant 1 : i32
    %0 = arith.muli %arg0, %c1_i32 : i32
    %1 = arith.addi %0, %arg2 : i32
    %c0_i32 = arith.constant 0 : i32
    %c0_i32_0 = arith.constant 0 : i32
    return %arg1, %1, %c0_i32 : i32, i32, i32
  }
  func.func @transform_7(%arg0: i32, %arg1: i32, %arg2: i32) -> (i32, i32, i32, i32) {
    %c0_i32 = arith.constant 0 : i32
    %c0_i32_0 = arith.constant 0 : i32
    %c0_i32_1 = arith.constant 0 : i32
    return %arg0, %arg1, %c0_i32, %c0_i32_0 : i32, i32, i32, i32
  }
}

</mosaic_0001>

<bundles_post_ra>
// kernel: tpu_custom_call.1
= control target key start
LH: loop header
LB: loop body
LE: loop exit
PB: predicated region body
PF: predicated region fallthrough
CT: control target
= control target key end

     0   :  { %s2619_s0 = inlined_call_operand.hbm [shape: bf16[2,64,128], index: 0, kind: input, shape index: {}]   ;;  %s2620_s1 = inlined_call_operand.hbm [shape: bf16[2,1,2,128], index: 1, kind: input, shape index: {}]   ;;  %s2621_s2 = inlined_call_operand.hbm [shape: f32[2,1,128], index: 2, kind: input, shape index: {}]   ;;  %s2622_s3 = inlined_call_operand.hbm [shape: f32[2,1,128], index: 3, kind: input, shape index: {}]   ;;  %s2623_s4 = inlined_call_operand.hbm [shape: bf16[3,128,64], index: 4, kind: input, shape index: {}]   ;;  %s2624_s5 = inlined_call_operand.hbm [shape: f32[1,1,64], index: 5, kind: input, shape index: {}]   ;;  %s2625_s6 = inlined_call_operand.hbm [shape: bf16[2,64,64], index: 6, kind: output, shape index: {0}]   ;;  %s2626_s7 = inlined_call_operand.hbm [shape: f32[1,2,2,64], index: 7, kind: output, shape index: {1}]  }
   0x1   :  { %2646 = sst [smem:[#allocation29_spill]] %s2619_s0 }
   0x2   :  { %2647 = sst [smem:[#allocation30_spill]] %s2620_s1 }
   0x3   :  { %2648 = sst [smem:[#allocation31_spill]] %s2623_s4 }
   0x4   :  { %2649 = sst [smem:[#allocation32_spill]] %s2626_s7 }
   0x5   :  { %13 = vsyncpa [#allocation4], 0 }
   0x6   :  { %15 = vsyncpa [#allocation4 + $0x1], 0 }
   0x7   :  { %16 = vsyncpa [#allocation7], 0 }
   0x8   :  { %18 = vsyncpa [#allocation7 + $0x1], 0 }
   0x9   :  { %19 = vsyncpa [#allocation10], 0 }
   0xa   :  { %21 = vsyncpa [#allocation10 + $0x1], 0 }
   0xb   :  { %22 = vsyncpa [#allocation13], 0 }
   0xc   :  { %23 = vsyncpa [#allocation5], 0 }
   0xd   :  { %25 = vsyncpa [#allocation5 + $0x1], 0 }
   0xe   :  { %26 = vsyncpa [#allocation16], 0 }
   0xf   :  { %28 = vsyncpa [#allocation16 + $0x1], 0  ;;  %s2122_s24 = smov 0   ;;  %s2124_s25 = smov 0  }
  0x10   :  { %s2126_s26 = smov 0   ;;  %s2128_s27 = smov 0  }
  0x11   :  { %s2130_s28 = smov 0   ;;  %s2132_s29 = smov 0  }
  0x12 LB: > { %2650 = sst [smem:[#allocation24_spill]] %s2045_s24  ;;  %s2153_s30 = sadd.s32 4294967295, %s2065_s29   ;;  %s2065_s29 = sphi %s2132_s29, %s34_s29   ;;  %s2061_s28 = sphi %s2130_s28, %s2698_s28   ;;  %s2057_s27 = sphi %s2128_s27, %s2697_s27   ;;  %s2053_s26 = sphi %s2126_s26, %s2693_s26   ;;  %s2049_s25 = sphi %s2124_s25, %s2696_s25   ;;  %s2045_s24 = sphi %s2122_s24, %s2695_s24  }
  0x13   : > { %2651 = sst [smem:[#allocation25_spill]] %s2053_s26  ;;  %s1410_s8 = sadd.s32 4294967294, %s2065_s29  }
  0x14   : > { %p77_p0 = scmp.ne.s32.totalorder %s2049_s25, %s2045_s24  ;;  %p2627_p1 = scmp.eq.s32.totalorder %s2153_s30, 0 }
  0x15   : > { %p235_p3 = scmp.eq.s32.totalorder %s1410_s8, 1  ;;  %p1411_p5 = scmp.ge.s32.totalorder %s2065_s29, 1 }
  0x16   : > { %p2162_p4 = por %p2627_p1, %p77_p0  ;;  %p270_p7 = scmp.lt.s32.totalorder %s2065_s29, 3 }
  0x17   : > { %p2167_p6 = por %p235_p3, %p77_p0  ;;  %s2067_s12 = smov [#allocation11]  }
  0x18   : > { %s2652_s9 = scalar_select %p2162_p4, 1, 0 }
  0x19   : > { %s2653_s10 = scalar_select %p2167_p6, 1, 0 }
  0x1a   : > { %p2172_p8 = pnand %p1411_p5, %p270_p7  ;;  %s282_s13 = sshll.u32 %s2067_s12, 4  ;;  %s283_s13 = int_to_ptr.vmem [resolvable:$true] %s282_s13 }
  0x1b   : > { %2654 = sst [smem:[#allocation26_spill]] %s2653_s10  ;;  %s49_s15 = sadd.s32 1, %s2061_s28 }
  0x1c   : > { %s2655_s11 = scalar_select %p2172_p8, 1, 0 }
  0x1d   : > { %p1641_p9 = pneg %p2172_p8  ;;  %s2657_s4 = sld [smem:[#allocation31_spill]] }
  0x1f   : > { %p2181_p11 = pnand %p1641_p9, %p2627_p1 }
  0x21   : > { %s2656_s14 = scalar_select %p2181_p11, 1, 0 }
  0x22   : > { %p2636_p13 = pneg %p2181_p11 }
  0x23   : > { %s1759_s18 = scalar_lea.hbm %s2657_s4, 3072 }
  0x24   : > { %p1760_p12 = scmp.ne.s32.totalorder %s2657_s4, %s1759_s18  ;;  %p1766_p5 = scmp.lt.u32.totalorder %s1759_s18, %s2657_s4 }
  0x26   : > { %p1762_p0 = pnand %p2636_p13, %p1760_p12 }
  0x28   : > { %p1763_p3 = pneg %p1762_p0 }
  0x2a   : > { %p1768_p7 = pnand %p1766_p5, %p1763_p3 }
  0x2c   : > { %1771 = shalt.err (!%p1768_p7)
}
  0x2d   : > { %s1772_s23 = scalar_lea.vmem %s283_s13, 3072  ;;  %p1780_p2 = scmp.lt.s32.totalorder %s283_s13, %s283_s13 }
  0x2e   : > { %p1773_p9 = scmp.ne.s32.totalorder %s283_s13, %s1772_s23  ;;  %p1781_p6 = scmp.lt.s32.totalorder %s1772_s23, %s1772_s23 }
  0x30   : > { %p1775_p10 = pnand %p1773_p9, %p2636_p13  ;;  %p1782_p4 = por %p1781_p6, %p1780_p2 }
  0x32   : > { %p1776_p1 = pneg %p1775_p10 }
  0x34   : > { %p1783_p8 = pnand %p1782_p4, %p1776_p1 }
  0x36   : > { %1786 = shalt.err (!%p1783_p8)
}
  0x37   : > { %s2630_s8 = smov 64   ;;  %s2631_s12 = smov 4  }
  0x38   : > { %1644 = dma.hbm_to_vmem [thread:$0]  (!%p2181_p11), %s2657_s4, 3072, %s283_s13, [#allocation10], %s2630_s8, %s2630_s8, %s2631_s12  }
  0x39   : > { %p51_p1 = scmp.ge.s32.totalorder %s49_s15, 2  ;;  %s64_s18 = sadd.s32 1, %s2053_s26 }
  0x3a   : > { %p71_p2 = scmp.ne.s32.totalorder %s2053_s26, %s2049_s25  ;;  %p72_p4 = scmp.eq.s32.totalorder %s2065_s29, 0 }
  0x3b   : > { %s2700_s15 = smov (%p51_p1, %s49_s15), 0  ;;  %p2659_p8 = scmp.eq.s32.totalorder %s2153_s30, 1 }
  0x3c   : > { %2658 = sst [smem:[#allocation27_spill]] %s2700_s15  ;;  %p73_p6 = por %p72_p4, %p71_p2 }
  0x3d   : > { %p2219_p10 = por %p2659_p8, %p71_p2  ;;  %s59_s20 = ssub.s32 %s2061_s28, %s2700_s15 }
  0x3e   : > { %p1670_p12 = scmp.lt.s32.totalorder %s2065_s29, 2  ;;  %p62_p0 = scmp.eq.s32.totalorder %s59_s20, 0 }
  0x3f   : > { %s2660_s19 = scalar_select %p2219_p10, 1, 0 }
  0x40   : > { %s2227_s21 = sand.u32 1, %s2053_s26   ;;  %p2229_p3 = pnand %p1670_p12, %p73_p6 }
  0x41   : > { %s2635_s22 = sand.u32 1, %s2065_s29   ;;  %s2238_s16 = sshll.u32 %s2061_s28, 4 }
  0x42   : > { %s2661_s13 = scalar_select %p2229_p3, 1, 0 }
  0x43   : > { %s2235_s23 = scalar_select %p62_p0, %s2053_s26, %s64_s18  }
  0x44   : > { %s2663_s1 = sld [smem:[#allocation30_spill]]  ;;  %s334_s20 = scalar_lea.vmem [#allocation6], %s2227_s21 }
  0x45   : > { %2662 = sst [smem:[#allocation28_spill]] %s2235_s23  ;;  %s343_s4 = sshll.u32 %s334_s20, 4  ;;  %s2247_s4 = int_to_ptr.vmem [resolvable:$true] %s343_s4 }
  0x46   : > { %s2251_s15 = scalar_lea.sflag [#allocation7], %s2635_s22  ;;  %p2257_p7 = pneg %p2229_p3 }
  0x48   : > { %s2664_s23 = scalar_select %p2257_p7, 1, 0 }
  0x4a   : > { %s2244_s12 = scalar_lea.hbm %s2663_s1, %s2238_s16  ;;  %s1792_s20 = scalar_lea.hbm %s2663_s1, 32 }
  0x4b   : > { %s1787_s18 = scalar_lea.hbm %s2244_s12, 16  ;;  %p1793_p2 = scmp.lt.u32.totalorder %s2244_s12, %s2663_s1 }
  0x4c   : > { %p1788_p5 = scmp.ne.s32.totalorder %s2244_s12, %s1787_s18  ;;  %p1794_p4 = scmp.lt.u32.totalorder %s1792_s20, %s1787_s18 }
  0x4d   : > { %p1796_p8 = scmp.lt.u32.totalorder %s1787_s18, %s2244_s12 }
  0x4e   : > { %p1790_p9 = pnand %p2257_p7, %p1788_p5  ;;  %p1795_p6 = por %p1794_p4, %p1793_p2 }
  0x50   : > { %p1791_p1 = pneg %p1790_p9  ;;  %p1797_p12 = por %p1796_p8, %p1795_p6 }
  0x52   : > { %p1798_p0 = pnand %p1797_p12, %p1791_p1 }
  0x54   : > { %1801 = shalt.err (!%p1798_p0)
}
  0x55   : > { %s1802_s22 = scalar_lea.vmem %s2247_s4, 16  ;;  %s2070_s8 = smov [#allocation6]  }
  0x56   : > { %p1803_p5 = scmp.ne.s32.totalorder %s2247_s4, %s1802_s22  ;;  %s1807_s17 = sshll.u32 %s2070_s8, 4  ;;  %s1808_s17 = int_to_ptr.vmem [resolvable:$false] %s1807_s17 }
  0x57   : > { %s1809_s26 = scalar_lea.vmem %s1808_s17, 32  ;;  %p1810_p10 = scmp.lt.s32.totalorder %s2247_s4, %s1808_s17 }
  0x58   : > { %p1805_p9 = pnand %p1803_p5, %p2257_p7  ;;  %p1811_p11 = scmp.lt.s32.totalorder %s1809_s26, %s1802_s22 }
  0x5a   : > { %p1806_p13 = pneg %p1805_p9  ;;  %p1812_p2 = por %p1811_p11, %p1810_p10 }
  0x5c   : > { %p1813_p4 = pnand %p1812_p2, %p1806_p13 }
  0x5e   : > { %1816 = shalt.err (!%p1813_p4)
}
  0x5f   : > { %1654 = dma.hbm_to_vmem [thread:$0]  (!%p2229_p3), %s2244_s12, 16, %s2247_s4, %s2251_s15  }
  0x60   : > { %s2071_s10 = smov [#allocation12]   ;;  %s1415_s20 = sshll.u32 %s2227_s21, 5 }
  0x61   : > { %s296_s18 = sshll.u32 %s2071_s10, 4  ;;  %s1817_s17 = scalar_lea.hbm %s2624_s5, 16  ;;  %s297_s18 = int_to_ptr.vmem [resolvable:$true] %s296_s18 }
  0x62   : > { %p1818_p11 = scmp.ne.s32.totalorder %s2624_s5, %s1817_s17  ;;  %p2665_p13 = scmp.ne.s32.totalorder %s2656_s14, 0 }
  0x63   : > { %p1824_p8 = scmp.lt.u32.totalorder %s1817_s17, %s2624_s5 }
  0x64   : > { %p2666_p10 = pneg %p2665_p13 }
  0x66   : > { %p1820_p1 = pnand %p1818_p11, %p2666_p10 }
  0x68   : > { %p1821_p6 = pneg %p1820_p1 }
  0x6a   : > { %p1826_p12 = pnand %p1824_p8, %p1821_p6 }
  0x6c   : > { %1829 = shalt.err (!%p1826_p12)
}
  0x6d   : > { %s1830_s4 = scalar_lea.vmem %s297_s18, 16  ;;  %p2667_p5 = pmov %p2666_p10 }
  0x6e   : > { %p1831_p0 = scmp.ne.s32.totalorder %s297_s18, %s1830_s4  ;;  %s1837_s1 = scalar_lea.vmem %s297_s18, 32 }
  0x6f   : > { %p1838_p4 = scmp.lt.s32.totalorder %s297_s18, %s297_s18  ;;  %p1839_p3 = scmp.lt.s32.totalorder %s1837_s1, %s1830_s4 }
  0x70   : > { %p1833_p9 = pnand %p1831_p0, %p2667_p5 }
  0x71   : > { %p1840_p7 = por %p1839_p3, %p1838_p4 }
  0x72   : > { %p1834_p2 = pneg %p1833_p9 }
  0x74   : > { %p1841_p10 = pnand %p1840_p7, %p1834_p2 }
  0x76   : > { %1844 = shalt.err (!%p1841_p10)
}
  0x77   : > { %1647 = dma.hbm_to_vmem [thread:$0]  (!%p2665_p13), %s2624_s5, 16, %s297_s18, [#allocation13]  }
  0x78   : > { %s1471_s24 = sshll.u32 %s2061_s28, 9  ;;  %s311_s10 = scalar_lea.vmem [#allocation3], %s1415_s20 }
  0x79   : > { %s321_s8 = sshll.u32 %s311_s10, 4  ;;  %s2668_s0 = sld [smem:[#allocation29_spill]]  ;;  %s2308_s8 = int_to_ptr.vmem [resolvable:$true] %s321_s8 }
  0x7a   : > { %s308_s14 = scalar_lea.sflag [#allocation4], %s2227_s21  ;;  %p2669_p7 = scmp.ne.s32.totalorder %s2664_s23, 0 }
  0x7f   : > { %s2306_s26 = scalar_lea.hbm %s2668_s0, %s1471_s24  ;;  %s1850_s1 = scalar_lea.hbm %s2668_s0, 1024 }
  0x80   : > { %s1845_s4 = scalar_lea.hbm %s2306_s26, 512  ;;  %p1851_p1 = scmp.lt.u32.totalorder %s2306_s26, %s2668_s0 }
  0x81   : > { %p1846_p3 = scmp.ne.s32.totalorder %s2306_s26, %s1845_s4  ;;  %p1852_p6 = scmp.lt.u32.totalorder %s1850_s1, %s1845_s4 }
  0x82   : > { %p1854_p12 = scmp.lt.u32.totalorder %s1845_s4, %s2306_s26 }
  0x83   : > { %p1848_p11 = pnand %p1846_p3, %p2669_p7  ;;  %p1853_p8 = por %p1852_p6, %p1851_p1 }
  0x85   : > { %p1849_p13 = pneg %p1848_p11  ;;  %p1855_p0 = por %p1854_p12, %p1853_p8 }
  0x87   : > { %p1856_p5 = pnand %p1855_p0, %p1849_p13 }
  0x89   : > { %1859 = shalt.err (!%p1856_p5)
}
  0x8a   : > { %s1860_s24 = scalar_lea.vmem %s2308_s8, 512  ;;  %s2072_s10 = smov [#allocation3]  }
  0x8b   : > { %p1861_p9 = scmp.ne.s32.totalorder %s2308_s8, %s1860_s24  ;;  %s1865_s17 = sshll.u32 %s2072_s10, 4  ;;  %s1866_s17 = int_to_ptr.vmem [resolvable:$false] %s1865_s17 }
  0x8c   : > { %s1867_s22 = scalar_lea.vmem %s1866_s17, 1024  ;;  %p1868_p10 = scmp.lt.s32.totalorder %s2308_s8, %s1866_s17 }
  0x8d   : > { %p1863_p2 = pnand %p1861_p9, %p2669_p7  ;;  %p1869_p3 = scmp.lt.s32.totalorder %s1867_s22, %s1860_s24 }
  0x8f   : > { %p1864_p4 = pneg %p1863_p2  ;;  %p1870_p11 = por %p1869_p3, %p1868_p10 }
  0x91   : > { %p1871_p1 = pnand %p1870_p11, %p1864_p4 }
  0x93   : > { %1874 = shalt.err (!%p1871_p1)
}
  0x94   : > { %p2670_p13 = scmp.ne.s32.totalorder %s2661_s13, 0  ;;  %s2671_s4 = smov 4  }
  0x95   : > { %s2672_s18 = smov 64   ;;  %s2341_s12 = scalar_lea.hbm %s2621_s2, %s2238_s16 }
  0x96   : > { %1651 = dma.hbm_to_vmem [thread:$0]  (!%p2670_p13), %s2306_s26, 512, %s2308_s8, %s308_s14, %s2672_s18, %s2672_s18, %s2671_s4  }
  0x97   : > { %s353_s7 = scalar_lea.vmem [#allocation8], %s2227_s21  ;;  %s2348_s22 = scalar_lea.hbm %s2622_s3, %s2238_s16 }
  0x98   : > { %s360_s24 = sshll.u32 %s353_s7, 4  ;;  %s1875_s0 = scalar_lea.hbm %s2341_s12, 16  ;;  %s361_s24 = int_to_ptr.vmem [resolvable:$true] %s360_s24 }
  0x99   : > { %p1876_p6 = scmp.ne.s32.totalorder %s2341_s12, %s1875_s0  ;;  %s1880_s14 = scalar_lea.hbm %s2621_s2, 32 }
  0x9a   : > { %p1881_p0 = scmp.lt.u32.totalorder %s2341_s12, %s2621_s2  ;;  %p1882_p5 = scmp.lt.u32.totalorder %s1880_s14, %s1875_s0 }
  0x9b   : > { %p1878_p8 = pnand %p1876_p6, %p2669_p7  ;;  %p1884_p2 = scmp.lt.u32.totalorder %s1875_s0, %s2341_s12 }
  0x9c   : > { %p1883_p9 = por %p1882_p5, %p1881_p0 }
  0x9d   : > { %p1879_p12 = pneg %p1878_p8 }
  0x9e   : > { %p1885_p4 = por %p1884_p2, %p1883_p9 }
  0xa0   : > { %p1886_p10 = pnand %p1885_p4, %p1879_p12 }
  0xa2   : > { %1889 = shalt.err (!%p1886_p10)
}
  0xa3   : > { %s1890_s16 = scalar_lea.vmem %s361_s24, 16  ;;  %s2073_s20 = smov [#allocation8]  }
  0xa4   : > { %p1891_p3 = scmp.ne.s32.totalorder %s361_s24, %s1890_s16  ;;  %s1895_s1 = sshll.u32 %s2073_s20, 4  ;;  %s1896_s1 = int_to_ptr.vmem [resolvable:$false] %s1895_s1 }
  0xa5   : > { %s1897_s7 = scalar_lea.vmem %s1896_s1, 32  ;;  %p1898_p6 = scmp.lt.s32.totalorder %s361_s24, %s1896_s1 }
  0xa6   : > { %p1893_p11 = pnand %p1891_p3, %p2669_p7  ;;  %p1899_p8 = scmp.lt.s32.totalorder %s1897_s7, %s1890_s16 }
  0xa8   : > { %p1894_p1 = pneg %p1893_p11  ;;  %p1900_p13 = por %p1899_p8, %p1898_p6 }
  0xaa   : > { %p1901_p0 = pnand %p1900_p13, %p1894_p1 }
  0xac   : > { %1904 = shalt.err (!%p1901_p0)
}
  0xad   : > { %p2673_p5 = scmp.ne.s32.totalorder %s2661_s13, 0  ;;  %s370_s0 = scalar_lea.vmem [#allocation9], %s2227_s21 }
  0xae   : > { %s377_s10 = sshll.u32 %s370_s0, 4  ;;  %s2674_s17 = sand.u32 1, %s2065_s29   ;;  %s378_s10 = int_to_ptr.vmem [resolvable:$true] %s377_s10 }
  0xaf   : > { %1657 = dma.hbm_to_vmem [thread:$0]  (!%p2673_p5), %s2341_s12, 16, %s361_s24, %s2251_s15  }
  0xb0   : > { %s368_s8 = scalar_lea.sflag [#allocation10], %s2674_s17  ;;  %s1905_s26 = scalar_lea.hbm %s2348_s22, 16 }
  0xb1   : > { %p1906_p13 = scmp.ne.s32.totalorder %s2348_s22, %s1905_s26  ;;  %s1910_s18 = scalar_lea.hbm %s2622_s3, 32 }
  0xb2   : > { %p1911_p2 = scmp.lt.u32.totalorder %s2348_s22, %s2622_s3  ;;  %p1912_p4 = scmp.lt.u32.totalorder %s1910_s18, %s1905_s26 }
  0xb3   : > { %p1908_p12 = pnand %p1906_p13, %p2669_p7  ;;  %p1914_p3 = scmp.lt.u32.totalorder %s1905_s26, %s2348_s22 }
  0xb4   : > { %p1913_p10 = por %p1912_p4, %p1911_p2 }
  0xb5   : > { %p1909_p9 = pneg %p1908_p12 }
  0xb6   : > { %p1915_p11 = por %p1914_p3, %p1913_p10 }
  0xb8   : > { %p1916_p1 = pnand %p1915_p11, %p1909_p9 }
  0xba   : > { %1919 = shalt.err (!%p1916_p1)
}
  0xbb   : > { %s1920_s15 = scalar_lea.vmem %s378_s10, 16  ;;  %s2074_s21 = smov [#allocation9]  }
  0xbc   : > { %p1921_p6 = scmp.ne.s32.totalorder %s378_s10, %s1920_s15  ;;  %s1925_s12 = sshll.u32 %s2074_s21, 4  ;;  %s1926_s12 = int_to_ptr.vmem [resolvable:$false] %s1925_s12 }
  0xbd   : > { %s1927_s24 = scalar_lea.vmem %s1926_s12, 32  ;;  %p1928_p13 = scmp.lt.s32.totalorder %s378_s10, %s1926_s12 }
  0xbe   : > { %p1923_p8 = pnand %p1921_p6, %p2669_p7  ;;  %p1929_p12 = scmp.lt.s32.totalorder %s1927_s24, %s1920_s15 }
  0xc0   : > { %p1924_p0 = pneg %p1923_p8  ;;  %p1930_p5 = por %p1929_p12, %p1928_p13 }
  0xc2   : > { %p1931_p2 = pnand %p1930_p5, %p1924_p0 }
  0xc4   : > { %1934 = shalt.err (!%p1931_p2)
}
  0xc5   : > { %p2675_p4 = scmp.ne.s32.totalorder %s2661_s13, 0  ;;  %p2676_p9 = scmp.ne.s32.totalorder %s2655_s11, 0 }
  0xc6   : > { %s2391_s23 = sand.u32 (!%p2676_p9), 1, %s2049_s25   ;;  %p2677_p7 = scmp.ne.s32.totalorder (!%p2676_p9), %s2652_s9, 0 }
  0xc7   : > { %1660 = dma.hbm_to_vmem [thread:$0]  (!%p2675_p4), %s2348_s22, 16, %s378_s10, %s368_s8  }
  0xc8   : > { %386 = sbr.rel (%p2676_p9) target bundleno = 564 (0x234), region = 44  ;;  %s1422_s1 = sshll.u32 (!%p2676_p9), %s2391_s23, 5 }
  0xc9   : > { %s389_s7 = scalar_lea.sflag (!%p2676_p9), [#allocation4], %s2391_s23  ;;  %s2397_s0 = scalar_lea.vmem (!%p2676_p9), [#allocation3], %s1422_s1 }
  0xcf   : > { %2016 = dma.done.wait (%p2677_p7), %s389_s7, 512  }
  0xd0   : > { %2018 = vsyncadd (%p2677_p7), %s389_s7, 4294966784  ;;  %s397_s11 = sand.u32 1, %s2153_s30   ;;  %s400_s22 = scalar_lea.vmem [#allocation6], %s2391_s23 }
  0xd1   : > { %s398_s13 = scalar_lea.sflag [#allocation7], %s397_s11 }
  0xd2   : > { %2020 = dma.done.wait (%p2677_p7), %s398_s13, 32  }
  0xd3   : > { %2022 = vsyncadd (%p2677_p7), %s398_s13, 4294967264  ;;  %s414_s10 = scalar_lea.sflag [#allocation10], %s397_s11 }
  0xd4   : > { %2024 = dma.done.wait (%p2677_p7), %s414_s10, 16  }
  0xd5   : > { %2026 = vsyncadd (%p2677_p7), %s414_s10, 4294967280  ;;  %p2678_p5 = scmp.eq.s32.totalorder %s2153_s30, 0 }
  0xd7   : > { %2028 = dma.done.wait (%p2678_p5), [#allocation10], 3072   ;;  %p2679_p10 = pmov %p2678_p5 }
  0xd8   : > { %p2680_p3 = pmov %p2678_p5 }
  0xd9   : > { %2030 = vsyncadd (%p2679_p10), [#allocation10], 4294964224 }
  0xda   : > { %2032 = dma.done.wait (%p2680_p3), [#allocation13], 16   ;;  %p2681_p11 = pmov %p2680_p3 }
  0xdb   : > { %v1731_v0 = vld [vmem:[#allocation11] sm:$0xff]   ;;  %v1733_v2 = vld [vmem:[#allocation11 + $0x8] sm:$0xff]   ;;  %v1735_v4 = vld [vmem:[#allocation11 + $0x10] sm:$0xff]   ;;  %v2075_v6 = vmov 1966171168   ;;  %v495_v8 = vlaneseq  ;;  %v2076_v11 = vmov 1  }
  0xdc   : > { %2034 = vsyncadd (%p2681_p11), [#allocation13], 4294967280  ;;  %v1732_v1 = vld [vmem:[#allocation11 + $0x40] sm:$0xff]   ;;  %1517 = vmatprep.subr.bf16.mxu1 %v1731_v0  ;;  %v1734_v3 = vld [vmem:[#allocation11 + $0x48] sm:$0xff]   ;;  %v493_v7 = vunpack.c.l.s4 %v2075_v6  ;;  %v488_v12 = vpack.c.b16 %v2076_v11, %v2076_v11  ;;  %vm557_vm0 = vsmask.f32 256 }
  0xdd   : > { %1541 = vmatprep.subr.bf16.mxu0 %v1732_v1  ;;  %1518 = vmatpush3.bf16.msra.mxu1 %v1731_v0  ;;  %v1736_v5 = vld [vmem:[#allocation11 + $0x50] sm:$0xff]   ;;  %v1737_v9 = vld [vmem:[#allocation11 + $0x18] sm:$0xff]   ;;  %v496_v14 = vshrl.u32 %v495_v8, 7  ;;  %v1739_v15 = vld [vmem:[#allocation11 + $0x20] sm:$0xff]   ;;  %vm556_vm1 = vcmask 1040384   ;;  %vm511_vm5 = vcmask 1047559  }
  0xde   : > { %1542 = vmatpush3.bf16.msra.mxu0 %v1732_v1  ;;  %1519 = vmatprep.subr.bf16.mxu1 %v1733_v2  ;;  %v1738_v10 = vld [vmem:[#allocation11 + $0x58] sm:$0xff]   ;;  %v494_v13 = vunpack.c.0.s8 %v493_v7  ;;  %v1740_v16 = vld [vmem:[#allocation11 + $0x60] sm:$0xff]   ;;  %vm489_vm2 = vcmp.ne.s16.totalorder %v488_v12, 0  ;;  %vm512_vm3 = vsmask.f32 7966  ;;  %vm2423_vm4 = vmand %vm556_vm1, %vm557_vm0  ;;  %s1426_s30 = sshll.u32 %s2391_s23, 1 }
  0xdf   : > { %1543 = vmatprep.subr.bf16.mxu0 %v1734_v3  ;;  %v1741_v19 = vld [vmem:[#allocation11 + $0x28] sm:$0xff]   ;;  %v2430_v23 = vld [vmem:[%s2397_s0] sm:$0xff]   ;;  %v1743_v24 = vld [vmem:[#allocation11 + $0x30] sm:$0xff]   ;;  %vm888_vm7 = vsmask.f32 7424  ;;  %vm1121_vm8 = vcmask 517120  }
  0xe0   : > { %v497_v17 = vsub.s32 %v494_v13, %v496_v14  ;;  %v479_v20 = vld [vmem:[%s400_s22] sm:$0x1]  ;;  %v1744_v26 = vld [vmem:[#allocation11 + $0x70] sm:$0xff]   ;;  %1557 = vmatprep.mubr.bf16.mxu0 %v2430_v23  ;;  %v2434_v28 = vld [vmem:[%s2397_s0 + $0x8] sm:$0xff]   ;;  %v605_v40 = vshrl.u32 %v2430_v23, 16  ;;  %v608_v48 = vshll.u32 %v2430_v23, 16 }
  0xe1   : > { %1520 = vmatpush3.bf16.msra.mxu1 %v1733_v2  ;;  %v1742_v21 = vld [vmem:[#allocation11 + $0x68] sm:$0xff]   ;;  %v490_v22 = vsel %vm489_vm2, 0, %v479_v20  ;;  %v559_v29 = vld [vmem:[#allocation2 + $0x28] sm:$0x1]  ;;  %v1745_v30 = vld [vmem:[#allocation11 + $0x38] sm:$0xff]   ;;  %v613_v41 = vshrl.u32 %v2434_v28, 16 }
  0xe2   : > { %1544 = vmatpush3.bf16.msra.mxu0 %v1734_v3  ;;  %1521 = vmatprep.subr.bf16.mxu1 %v1735_v4  ;;  %v498_v25 = vrot.slane %v490_v22, %v497_v17  ;;  %vm2437_vm6 = vmand %vm511_vm5, %vm512_vm3  ;;  %v514_v33 = vld [vmem:[#allocation2] sm:$0x80]  ;;  %v1746_v35 = vld [vmem:[#allocation11 + $0x78] sm:$0xff]   ;;  %v616_v46 = vshll.u32 %v2434_v28, 16  ;;  %v607_v47 = vrot.slane %v605_v40, 7  ;;  %v894_v52 = vrot.slane %v608_v48, 1 }
  0xe3   : > { %1545 = vmatprep.subr.bf16.mxu0 %v1736_v5  ;;  %v1754_v38 = vld [vmem:[%s2397_s0 + $0x10] sm:$0xff]   ;;  %v2449_v43 = vld [vmem:[%s2397_s0 + $0x18] sm:$0xff]   ;;  %v1748_v44 = vld [vmem:[#allocation11 + $0x80] sm:$0xff]   ;;  %v615_v45 = vrot.slane %v613_v41, 7  ;;  %s2474_s9 = scalar_lea.vmem [#allocation15], %s1426_s30  ;;  %v2077_v23 = vmov 0.0  }
  0xe4   : > { %v505_v27 = vrot.slane %v498_v25, %v497_v17  ;;  %v621_v42 = vshrl.u32 %v1754_v38, 16  ;;  %v624_v50 = vshll.u32 %v1754_v38, 16  ;;  %v1750_v51 = vld [vmem:[#allocation11 + $0x88] sm:$0xff]   ;;  %v629_v55 = vshrl.u32 %v2449_v43, 16  ;;  %v1751_v60 = vld [vmem:[#allocation11 + $0x90] sm:$0xff]   ;;  %s2480_s17 = scalar_lea.vmem [#allocation14], %s1422_s1 }
  0xe5   : > { %1522 = vmatpush3.bf16.msra.mxu1 %v1735_v4  ;;  %v618_v54 = vor.u32 %v616_v46, %v615_v45  ;;  %v610_v57 = vor.u32 %v608_v48, %v607_v47  ;;  %v895_v61 = vor.u32 %v894_v52, %v605_v40  ;;  %v899_v62 = vrot.slane %v616_v46, 1  ;;  %v1755_v13 = vld [vmem:[#allocation11 + $0xa8] sm:$0xff]   ;;  %v1757_v14 = vld [vmem:[#allocation11 + $0xb0] sm:$0xff]   ;;  %1122 = vst.msk [vmem:[%s2474_s9] sm:$0x3] %vm1121_vm8, %v2077_v23  ;;  %s1480_s8 = sshll.u32 %s2057_s27, 9 }
  0xe6   : > { %1546 = vmatpush3.bf16.msra.mxu0 %v1736_v5  ;;  %1523 = vmatprep.subr.bf16.mxu1 %v1737_v9  ;;  %v507_v31 = vshll.u32 %v505_v27, 16  ;;  %v553_v34 = vshrl.u32 %v505_v27, 16  ;;  %v623_v49 = vrot.slane %v621_v42, 7  ;;  %v631_v0 = vrot.slane %v629_v55, 7  ;;  %v1752_v5 = vld [vmem:[#allocation11 + $0x98] sm:$0xff]   ;;  %s1190_s26 = sshll.u32 %s2480_s17, 4  ;;  %s2516_s18 = scalar_lea.hbm %s2625_s6, %s1480_s8  ;;  %s2518_s26 = int_to_ptr.vmem [resolvable:$true] %s1190_s26 }
  0xe7   : > { %1547 = vmatprep.subr.bf16.mxu0 %v1738_v10  ;;  %v619_v63 = vsel %vm557_vm0, %v607_v47, %v618_v54  ;;  %v632_v1 = vshll.u32 %v2449_v43, 16  ;;  %v907_v4 = vrot.slane %v624_v50, 1  ;;  %v900_v6 = vsel %vm888_vm7, %v895_v61, %v899_v62  ;;  %s1169_s16 = scalar_lea.sflag [#allocation5], %s2391_s23  ;;  %s1935_s20 = scalar_lea.vmem %s2518_s26, 512 }
  0xe8   : > { %v509_v36 = vrot.slane %v507_v31, 1  ;;  %v560_v37 = vsel %vm2423_vm4, %v553_v34, %v559_v29  ;;  %v626_v58 = vor.u32 %v624_v50, %v623_v49  ;;  %v903_v17 = vor.u32 %v899_v62, %v613_v41  ;;  %v1455_v41 = vld [vmem:[#allocation12] ss:$0 sm:$0xff]  ;;  %p1936_p1 = scmp.ne.s32.totalorder %s2518_s26, %s1935_s20  ;;  %p2686_p6 = scmp.ne.s32.totalorder %s2660_s19, 0 }
  0xe9   : > { %1524 = vmatpush3.bf16.msra.mxu1 %v1737_v9  ;;  %561 = vst [vmem:[#allocation2 + $0x28] sm:$0x1] %v560_v37  ;;  %v634_v7 = vor.u32 %v632_v1, %v631_v0  ;;  %v911_v8 = vor.u32 %v907_v4, %v621_v42  ;;  %v915_v9 = vrot.slane %v632_v1, 1  ;;  %vm1159_vm9 = vcmask 519168   ;;  %s2078_s15 = smov [#allocation14]  }
  0xea   : > { %1548 = vmatpush3.bf16.msra.mxu0 %v1738_v10  ;;  %1525 = vmatprep.subr.bf16.mxu1 %v1739_v15  ;;  %v515_v39 = vsel %vm2437_vm6, %v509_v36, %v514_v33  ;;  %v627_v3 = vsel %vm557_vm0, %v615_v45, %v626_v58  ;;  %v1753_v10 = vld [vmem:[#allocation11 + $0xa0] sm:$0xff]   ;;  %vm1065_vm10 = vcmask 523264   ;;  %p1937_p8 = pnand %p1936_p1, %p2686_p6  ;;  %s1939_s21 = sshll.u32 %s2078_s15, 4  ;;  %s1940_s21 = int_to_ptr.vmem [resolvable:$false] %s1939_s21 }
  0xeb   : > { %1549 = vmatprep.subr.bf16.mxu0 %v1740_v16  ;;  %516 = vst [vmem:[#allocation2] sm:$0x80] %v515_v39  ;;  %v635_v11 = vsel %vm557_vm0, %v623_v49, %v634_v7  ;;  %v916_v12 = vsel %vm888_vm7, %v911_v8, %v915_v9  ;;  %v919_v20 = vor.u32 %v915_v9, %v629_v55  ;;  %s1941_s12 = scalar_lea.vmem %s1940_s21, 1024  ;;  %p1942_p13 = scmp.lt.s32.totalorder %s2518_s26, %s1940_s21 }
  0xec   : > { %p1938_p0 = pneg %p1937_p8  ;;  %p1943_p12 = scmp.lt.s32.totalorder %s1941_s12, %s1935_s20 }
  0xed   : > { %1526 = vmatpush3.bf16.msra.mxu1 %v1739_v15  ;;  %v1758_v15 = vld [vmem:[#allocation11 + $0xb8] sm:$0xff]  }
  0xee   : > { %1550 = vmatpush3.bf16.msra.mxu0 %v1740_v16  ;;  %1527 = vmatprep.subr.bf16.mxu1 %v1741_v19  ;;  %p1944_p2 = por %p1943_p12, %p1942_p13 }
  0xef   : > { %1551 = vmatprep.subr.bf16.mxu0 %v1742_v21 }
  0xf0   : > { %v870_v16 = vld [vmem:[#allocation2 + $0x28] sm:$0x1]  ;;  %p1945_p4 = pnand %p1944_p2, %p1938_p0 }
  0xf1   : > { %1528 = vmatpush3.bf16.msra.mxu1 %v1741_v19  ;;  %v921_v18 = vshll.u32 %v870_v16, 16  ;;  %v908_v19 = vsel %vm888_vm7, %v903_v17, %v907_v4 }
  0xf2   : > { %1552 = vmatpush3.bf16.msra.mxu0 %v1742_v21  ;;  %1529 = vmatprep.subr.bf16.mxu1 %v1743_v24  ;;  %v583_v53 = vld [vmem:[#allocation2] sm:$0x80] }
  0xf3   : > { %1553 = vmatprep.subr.bf16.mxu0 %v1744_v26  ;;  %v601_v56 = vshrl.u32 %v583_v53, 16  ;;  %v923_v21 = vrot.slane %v921_v18, 1 }
  0xf5   : > { %1530 = vmatpush3.bf16.msra.mxu1 %v1743_v24  ;;  %v603_v59 = vrot.slane %v601_v56, 7  ;;  %v924_v22 = vsel %vm888_vm7, %v919_v20, %v923_v21 }
  0xf6   : > { %1554 = vmatpush3.bf16.msra.mxu0 %v1744_v26  ;;  %1531 = vmatprep.subr.bf16.mxu1 %v1745_v30 }
  0xf7   : > { %1555 = vmatprep.subr.bf16.mxu0 %v1746_v35  ;;  %v611_v2 = vsel %vm557_vm0, %v603_v59, %v610_v57 }
  0xf8   : > { %1533 = vmatprep.mubr.bf16.mxu1 %v611_v2 }
  0xf9   : > { %1532 = vmatpush3.bf16.msra.mxu1 %v1745_v30 }
  0xfa   : > { %1556 = vmatpush3.bf16.msra.mxu0 %v1746_v35  ;;  %1589 = vmatprep.subr.bf16.mxu1 %v1748_v44 }
  0xfb   : > { %1565 = vmatprep.subr.bf16.mxu0 %v1748_v44 }
  0xfc   : > { %1534 = vmatmul.mubr.bf16.vlgmr.msra.gmra.mrb[0].mxu1 %v619_v63 }
  0xfd   : > { %1558 = vmatmul.mubr.bf16.vlgmr.msra.gmra.mrb[0].mxu0 %v2434_v28  ;;  %1597 = vmatpush3.bf16.msra.mxu1 %v1748_v44 }
  0xfe   : > { %1566 = vmatpush3.bf16.msra.mxu0 %v1748_v44  ;;  %1561 = vmatprep.mubr.bf16.mxu0 %v1754_v38 }
  0xff   : > { %1567 = vmatprep.subr.bf16.mxu0 %v1750_v51  ;;  %1537 = vmatprep.mubr.bf16.mxu1 %v627_v3 }
 0x100   : > { %1590 = vmatprep.subr.bf16.mxu1 %v1750_v51 }
 0x101   : > { %1598 = vmatpush3.bf16.msra.mxu1 %v1750_v51 }
 0x102   : > { %1568 = vmatpush3.bf16.msra.mxu0 %v1750_v51  ;;  %1591 = vmatprep.subr.bf16.mxu1 %v1751_v60 }
 0x103   : > { %1569 = vmatprep.subr.bf16.mxu0 %v1751_v60 }
 0x104   : > { %1538 = vmatmul.mubr.bf16.gmra.mrb[4].mxu1 %v635_v11 }
 0x105   : > { %1562 = vmatmul.mubr.bf16.gmra.mrb[4].mxu0 %v2449_v43  ;;  %1599 = vmatpush3.bf16.msra.mxu1 %v1751_v60 }
 0x106   : > { %1570 = vmatpush3.bf16.msra.mxu0 %v1751_v60  ;;  %1581 = vmatprep.mubr.bf16.mxu0 %v900_v6 }
 0x107   : > { %1571 = vmatprep.subr.bf16.mxu0 %v1752_v5  ;;  %1585 = vmatprep.mubr.bf16.mxu1 %v916_v12 }
 0x108   : > { %1592 = vmatprep.subr.bf16.mxu1 %v1752_v5 }
 0x109   : > { %1600 = vmatpush3.bf16.msra.mxu1 %v1752_v5 }
 0x10a   : > { %1572 = vmatpush3.bf16.msra.mxu0 %v1752_v5  ;;  %1593 = vmatprep.subr.bf16.mxu1 %v1753_v10 }
 0x10b   : > { %1573 = vmatprep.subr.bf16.mxu0 %v1753_v10 }
 0x10d   : > { %1601 = vmatpush3.bf16.msra.mxu1 %v1753_v10 }
 0x10e   : > { %1574 = vmatpush3.bf16.msra.mxu0 %v1753_v10  ;;  %1594 = vmatprep.subr.bf16.mxu1 %v1755_v13 }
 0x10f   : > { %1575 = vmatprep.subr.bf16.mxu0 %v1755_v13 }
 0x111   : > { %1602 = vmatpush3.bf16.msra.mxu1 %v1755_v13 }
 0x112   : > { %1576 = vmatpush3.bf16.msra.mxu0 %v1755_v13  ;;  %1595 = vmatprep.subr.bf16.mxu1 %v1757_v14 }
 0x113   : > { %1577 = vmatprep.subr.bf16.mxu0 %v1757_v14 }
 0x115   : > { %1603 = vmatpush3.bf16.msra.mxu1 %v1757_v14 }
 0x116   : > { %1578 = vmatpush3.bf16.msra.mxu0 %v1757_v14  ;;  %1596 = vmatprep.subr.bf16.mxu1 %v1758_v15 }
 0x117   : > { %1579 = vmatprep.subr.bf16.mxu0 %v1758_v15 }
 0x119   : > { %1604 = vmatpush3.bf16.msra.mxu1 %v1758_v15 }
 0x11a   : > { %1580 = vmatpush3.bf16.msra.mxu0 %v1758_v15 }
 0x11c   : > { %1586 = vmatmul.mubr.bf16.vlgmr.msra.gmra.mrb[8].mxu1 %v924_v22 }
 0x11d   : > { %1582 = vmatmul.mubr.bf16.vlgmr.msra.gmra.mrb[0].mxu0 %v908_v19 }
 0x1cf   : > { %v1535_v24 = vpop.f32.mrb[0].mxu1 }
 0x1d0   : > { %v722_v25 = vpop.f32.mrb[1].mxu1 }
 0x1d1   : > { %v1536_v26 = vpop.f32.mrb[2].mxu1 }
 0x1d2   : > { %v725_v28 = vpop.f32.mrb[3].mxu1 }
 0x1d7   : > { %v1539_v32 = vpop.f32.mrb[4].mxu1 }
 0x1d8   : > { %v1563_v27 = vpop.f32.mrb[4].mxu0  ;;  %v738_v34 = vpop.f32.mrb[5].mxu1 }
 0x1d9   : > { %v851_v29 = vpop.f32.mrb[5].mxu0  ;;  %v860_v33 = vadd.f32 %v1563_v27, %v1539_v32  ;;  %v1540_v36 = vpop.f32.mrb[6].mxu1 }
 0x1da   : > { %v1564_v30 = vpop.f32.mrb[6].mxu0  ;;  %v852_v35 = vadd.f32 %v851_v29, %v738_v34  ;;  %v741_v38 = vpop.f32.mrb[7].mxu1 }
 0x1db   : > { %v854_v31 = vpop.f32.mrb[7].mxu0  ;;  %v863_v37 = vadd.f32 %v1564_v30, %v1540_v36 }
 0x1dc   : > { %v855_v39 = vadd.f32 %v854_v31, %v741_v38 }
 0x1ef   : > { %v1587_v53 = vpop.f32.mrb[8].mxu1 }
 0x1f0   : > { %v1583_v40 = vpop.f32.mrb[0].mxu0  ;;  %v1048_v56 = vadd.f32 %v1587_v53, %v860_v33  ;;  %v1027_v57 = vpop.f32.mrb[9].mxu1 }
 0x1f1   : > { %v1605_v42 = vadd.f32 %v1583_v40, %v1535_v24  ;;  %v1011_v43 = vpop.f32.mrb[1].mxu0  ;;  %v1046_v59 = vadd.f32 %v1027_v57, %v852_v35  ;;  %v1588_v61 = vpop.f32.mrb[10].mxu1 }
 0x1f2   : > { %v1606_v44 = vadd.f32 %v1011_v43, %v722_v25  ;;  %v1584_v45 = vpop.f32.mrb[2].mxu0  ;;  %v2488_v63 = vadd.f32 %v1455_v41, %v1048_v56  ;;  %v1049_v1 = vadd.f32 %v1588_v61, %v863_v37  ;;  %v1030_v3 = vpop.f32.mrb[11].mxu1 }
 0x1f3   : > { %v1059_v46 = vadd.f32 %v1605_v42, %v1455_v41  ;;  %v1607_v47 = vadd.f32 %v1584_v45, %v1536_v26  ;;  %v1014_v48 = vpop.f32.mrb[3].mxu0  ;;  %v1061_v4 = vadd.f32 %v1455_v41, %v1046_v59  ;;  %v1047_v7 = vadd.f32 %v1030_v3, %v855_v39 }
 0x1f4   : > { %v1057_v49 = vadd.f32 %v1606_v44, %v1455_v41  ;;  %v1608_v50 = vadd.f32 %v1014_v48, %v725_v28  ;;  %v1478_v9 = vpack.c.bf16 %v2488_v63, %v2488_v63  ;;  %v2495_v10 = vadd.f32 %v1455_v41, %v1049_v1 }
 0x1f5   : > { %v1474_v51 = vpack.c.bf16 %v1059_v46, %v1059_v46  ;;  %v1060_v52 = vadd.f32 %v1607_v47, %v1455_v41  ;;  %v1069_v8 = vsel %vm1065_vm10, %v1059_v46, 0.0  ;;  %v1089_v11 = vmul.f32 %v1059_v46, %v1059_v46 }
 0x1f6   : > { %v1472_v54 = vpack.c.bf16 %v1057_v49, %v1057_v49  ;;  %v1058_v55 = vadd.f32 %v1608_v50, %v1455_v41  ;;  %v1066_v58 = vsel %vm1065_vm10, %v1057_v49, 0.0  ;;  %v1087_v0 = vmul.f32 %v1057_v49, %v1057_v49  ;;  %1166 = vst.msk [vmem:[%s2480_s17 + $0x18] sm:$0xf] %vm1159_vm9, %v1478_v9 }
 0x1f7   : > { %1162 = vst.msk [vmem:[%s2480_s17 + $0x8] sm:$0xf] %vm1159_vm9, %v1474_v51  ;;  %v1475_v60 = vpack.c.bf16 %v1060_v52, %v1060_v52  ;;  %v1476_v12 = vpack.c.bf16 %v1061_v4, %v1061_v4  ;;  %v1071_v14 = vsel %vm1065_vm10, %v1060_v52, 0.0  ;;  %v1090_v15 = vmul.f32 %v1060_v52, %v1060_v52 }
 0x1f8   : > { %1160 = vst.msk [vmem:[%s2480_s17] sm:$0xf] %vm1159_vm9, %v1472_v54  ;;  %v1067_v62 = vsel %vm1065_vm10, %v1058_v55, 0.0  ;;  %v1088_v5 = vmul.f32 %v1058_v55, %v1058_v55  ;;  %v1473_v6 = vpack.c.bf16 %v1058_v55, %v1058_v55  ;;  %v1479_v16 = vpack.c.bf16 %v2495_v10, %v2495_v10 }
 0x1f9   : > { %v1068_v2 = vadd.f32 %v1067_v62, %v1066_v58  ;;  %1163 = vst.msk [vmem:[%s2480_s17 + $0xc] sm:$0xf] %vm1159_vm9, %v1475_v60  ;;  %v1095_v17 = vsel %vm1065_vm10, %v1087_v0, 0.0  ;;  %1164 = vst.msk [vmem:[%s2480_s17 + $0x10] sm:$0xf] %vm1159_vm9, %v1476_v12  ;;  %v1062_v19 = vadd.f32 %v1455_v41, %v1047_v7  ;;  %v1073_v21 = vsel %vm1065_vm10, %v1061_v4, 0.0 }
 0x1fa   : > { %1161 = vst.msk [vmem:[%s2480_s17 + $0x4] sm:$0xf] %vm1159_vm9, %v1473_v6  ;;  %v1096_v18 = vsel %vm1065_vm10, %v1088_v5, 0.0  ;;  %1167 = vst.msk [vmem:[%s2480_s17 + $0x1c] sm:$0xf] %vm1159_vm9, %v1479_v16  ;;  %v1098_v23 = vsel %vm1065_vm10, %v1089_v11, 0.0  ;;  %v1091_v24 = vmul.f32 %v1061_v4, %v1061_v4 }
 0x1fb   : > { %v1070_v13 = vadd.f32 %v1069_v8, %v1068_v2  ;;  %v1097_v22 = vadd.f32 %v1096_v18, %v1095_v17  ;;  %v1477_v26 = vpack.c.bf16 %v1062_v19, %v1062_v19  ;;  %v1075_v28 = vsel %vm1065_vm10, %v1062_v19, 0.0 }
 0x1fc   : > { %v1100_v29 = vsel %vm1065_vm10, %v1090_v15, 0.0  ;;  %v1092_v31 = vmul.f32 %v1062_v19, %v1062_v19  ;;  %v1077_v32 = vsel %vm1065_vm10, %v2488_v63, 0.0 }
 0x1fd   : > { %v1072_v20 = vadd.f32 %v1071_v14, %v1070_v13  ;;  %v1099_v27 = vadd.f32 %v1098_v23, %v1097_v22  ;;  %1165 = vst.msk [vmem:[%s2480_s17 + $0x14] sm:$0xf] %vm1159_vm9, %v1477_v26 }
 0x1ff   : > { %v1074_v25 = vadd.f32 %v1073_v21, %v1072_v20  ;;  %v1101_v33 = vadd.f32 %v1100_v29, %v1099_v27 }
 0x201   : > { %v1076_v30 = vadd.f32 %v1075_v28, %v1074_v25 }
 0x202   : > { %1948 = shalt.err (!%p1945_p4)
}
 0x203   : > { %s1949_s24 = scalar_lea.hbm %s2516_s18, 512  ;;  %s1953_s0 = scalar_lea.hbm %s2625_s6, 1024 }
 0x204   : > { %p1950_p9 = scmp.ne.s32.totalorder %s2516_s18, %s1949_s24  ;;  %p1954_p10 = scmp.lt.u32.totalorder %s2516_s18, %s2625_s6 }
 0x205   : > { %p1955_p3 = scmp.lt.u32.totalorder %s1953_s0, %s1949_s24  ;;  %p1957_p1 = scmp.lt.u32.totalorder %s1949_s24, %s2516_s18 }
 0x206   : > { %p1951_p7 = pnand %p1950_p9, %p2686_p6 }
 0x207   : > { %p1956_p11 = por %p1955_p3, %p1954_p10 }
 0x208   : > { %p1952_p5 = pneg %p1951_p7 }
 0x209   : > { %p1958_p8 = por %p1957_p1, %p1956_p11 }
 0x20b   : > { %p1959_p0 = pnand %p1958_p8, %p1952_p5 }
 0x20d   : > { %1962 = shalt.err (!%p1959_p0)
}
 0x20e   : > { %s2079_s22 = smov 64   ;;  %s2080_s10 = smov 4   ;;  %v1093_v34 = vmul.f32 %v2488_v63, %v2488_v63  ;;  %v1102_v35 = vsel %vm1065_vm10, %v1091_v24, 0.0  ;;  %v1078_v36 = vadd.f32 %v1077_v32, %v1076_v30  ;;  %v1079_v37 = vsel %vm1065_vm10, %v2495_v10, 0.0  ;;  %v1123_v59 = vld [vmem:[%s2474_s9] sm:$0x3] }
 0x20f   : > { %1637 = dma.vmem_to_hbm [thread:$0]  (%p2686_p6), %s2518_s26, 512, %s2516_s18, %s1169_s16, %s2079_s22, %s2079_s22, %s2080_s10   ;;  %v1103_v38 = vadd.f32 %v1102_v35, %v1101_v33  ;;  %v1094_v39 = vmul.f32 %v2495_v10, %v2495_v10  ;;  %v1104_v41 = vsel %vm1065_vm10, %v1092_v31, 0.0 }
 0x210   : > { %v1080_v40 = vadd.f32 %v1079_v37, %v1078_v36  ;;  %v1106_v43 = vsel %vm1065_vm10, %v1093_v34, 0.0  ;;  %s1468_s30 = sshll.u32 %s2057_s27, 5  ;;  %s1208_s17 = sshll.u32 %s2474_s9, 4  ;;  %s2570_s17 = int_to_ptr.vmem [resolvable:$true] %s1208_s17 }
 0x211   : > { %v1105_v42 = vadd.f32 %v1104_v41, %v1103_v38  ;;  %v1108_v46 = vsel %vm1065_vm10, %v1094_v39, 0.0  ;;  %s2687_s14 = sld [smem:[#allocation32_spill]]  ;;  %s1174_s18 = scalar_lea.sflag [#allocation16], %s2391_s23 }
 0x212   : > { %v1081_v44 = vrot.slane %v1080_v40, 4  ;;  %s1963_s16 = scalar_lea.vmem %s2570_s17, 32  ;;  %s2081_s27 = smov [#allocation15]  }
 0x213   : > { %v1107_v45 = vadd.f32 %v1106_v43, %v1105_v42  ;;  %p1964_p13 = scmp.ne.s32.totalorder %s2570_s17, %s1963_s16  ;;  %s1967_s20 = sshll.u32 %s2081_s27, 4  ;;  %s1968_s20 = int_to_ptr.vmem [resolvable:$false] %s1967_s20 }
 0x214   : > { %v1082_v47 = vadd.f32 %v1081_v44, %v1080_v40  ;;  %s1969_s15 = scalar_lea.vmem %s1968_s20, 64  ;;  %p1970_p4 = scmp.lt.s32.totalorder %s2570_s17, %s1968_s20 }
 0x215   : > { %v1109_v48 = vadd.f32 %v1108_v46, %v1107_v45  ;;  %p1965_p12 = pnand %p1964_p13, %p2686_p6  ;;  %p1971_p9 = scmp.lt.s32.totalorder %s1969_s15, %s1963_s16 }
 0x216   : > { %v1083_v49 = vrot.slane %v1082_v47, 2 }
 0x217   : > { %v1110_v50 = vrot.slane %v1109_v48, 4  ;;  %s2568_s4 = scalar_lea.hbm %s2687_s14, %s1468_s30  ;;  %p1966_p2 = pneg %p1965_p12 }
 0x218   : > { %v1084_v51 = vadd.f32 %v1083_v49, %v1082_v47  ;;  %p1972_p7 = por %p1971_p9, %p1970_p4 }
 0x219   : > { %v1111_v52 = vadd.f32 %v1110_v50, %v1109_v48 }
 0x21a   : > { %v1085_v54 = vrot.slane %v1084_v51, 1  ;;  %p1973_p5 = pnand %p1972_p7, %p1966_p2 }
 0x21b   : > { %v1112_v53 = vrot.slane %v1111_v52, 2 }
 0x21c   : > { %v1086_v57 = vadd.f32 %v1085_v54, %v1084_v51 }
 0x21d   : > { %v1113_v55 = vadd.f32 %v1112_v53, %v1111_v52 }
 0x21f   : > { %v1114_v56 = vrot.slane %v1113_v55, 1 }
 0x221   : > { %v1115_v58 = vadd.f32 %v1114_v56, %v1113_v55 }
 0x223   : > { %v1117_v60 = vsel %vm556_vm1, %v1086_v57, %v1115_v58 }
 0x224   : > { %v1124_v61 = vadd.f32 %v1123_v59, %v1117_v60 }
 0x226   : > { %1126 = vst.msk [vmem:[%s2474_s9] sm:$0x3] %vm1121_vm8, %v1124_v61 }
 0x227   : > { %1976 = shalt.err (!%p1973_p5)
}
 0x228   : > { %s1977_s23 = scalar_lea.hbm %s2568_s4, 32  ;;  %s1981_s12 = scalar_lea.hbm %s2687_s14, 64 }
 0x229   : > { %p1978_p10 = scmp.ne.s32.totalorder %s2568_s4, %s1977_s23  ;;  %p1982_p1 = scmp.lt.u32.totalorder %s2568_s4, %s2687_s14 }
 0x22a   : > { %p1983_p8 = scmp.lt.u32.totalorder %s1981_s12, %s1977_s23  ;;  %p1985_p13 = scmp.lt.u32.totalorder %s1977_s23, %s2568_s4 }
 0x22b   : > { %p1979_p3 = pnand %p1978_p10, %p2686_p6 }
 0x22c   : > { %p1984_p0 = por %p1983_p8, %p1982_p1 }
 0x22d   : > { %p1980_p11 = pneg %p1979_p3 }
 0x22e   : > { %p1986_p12 = por %p1985_p13, %p1984_p0 }
 0x230   : > { %p1987_p2 = pnand %p1986_p12, %p1980_p11 }
 0x232   : > { %1990 = shalt.err (!%p1987_p2)
}
 0x233   : > { %1638 = dma.vmem_to_hbm [thread:$0]  (%p2686_p6), %s2570_s17, 32, %s2568_s4, %s1174_s18  }
 0x234 PF: > { %s2688_s7 = sld [smem:[#allocation24_spill]]  ;;  %s2689_s0 = sld [smem:[#allocation26_spill]] }
 0x235   : > { %p2691_p9 = scmp.ge.s32.totalorder %s2065_s29, 2 }
 0x23a   : > { %s1220_s11 = sand.u32 1, %s2688_s7   ;;  %p2690_p4 = scmp.ne.s32.totalorder %s2689_s0, 0 }
 0x23b   : > { %s1221_s13 = scalar_lea.sflag [#allocation5], %s1220_s11 }
 0x23c   : > { %p1662_p7 = pnand %p2691_p9, %p2690_p4 }
 0x23e   : > { %2036 = dma.done.wait (!%p1662_p7), %s1221_s13, 512  }
 0x23f   : > { %2038 = vsyncadd (!%p1662_p7), %s1221_s13, 4294966784  ;;  %s1230_s22 = scalar_lea.sflag [#allocation16], %s1220_s11 }
 0x240   : > { %2040 = dma.done.wait (!%p1662_p7), %s1230_s22, 32  }
 0x241   : > { %2042 = vsyncadd (!%p1662_p7), %s1230_s22, 4294967264  ;;  %s34_s29 = sadd.s32 1, %s2065_s29   ;;  %s2692_s19 = sld [smem:[#allocation25_spill]] }
 0x242   : > { %p31_p5 = scmp.ge.s32.totalorder %s34_s29, 4   ;;  %s2693_s26 = sld [smem:[#allocation28_spill]] }
 0x243   : > { %s2694_s10 = sld [smem:[#allocation27_spill]]  ;;  %s2695_s24 = smov %s2049_s25 }
 0x244   : > { %s2697_s27 = smov %s2061_s28  ;;  %33 = sbr.rel (!%p31_p5) target bundleno = 18 (0x12), region = 157 }
 0x247   : > { %s2696_s25 = smov %s2692_s19 }
 0x249   : > { %s2698_s28 = smov %s2694_s10 }
 0x24b   :  { %1235 = vsyncpa [#allocation4], 1 }
 0x24c   :  { %1237 = vsyncpa [#allocation4 + $0x1], 1 }
 0x24d   :  { %1238 = vsyncpa [#allocation7], 1 }
 0x24e   :  { %1240 = vsyncpa [#allocation7 + $0x1], 1 }
 0x24f   :  { %1241 = vsyncpa [#allocation10], 1 }
 0x250   :  { %1243 = vsyncpa [#allocation10 + $0x1], 1 }
 0x251   :  { %1244 = vsyncpa [#allocation13], 1 }
 0x252   :  { %1245 = vsyncpa [#allocation5], 1 }
 0x253   :  { %1247 = vsyncpa [#allocation5 + $0x1], 1 }
 0x254   :  { %1248 = vsyncpa [#allocation16], 1 }
 0x255   :  { %1250 = vsyncpa [#allocation16 + $0x1], 1 }

</bundles_post_ra>
